<compile_context>
chip_gen: v5e
topology: v5e:2x2
jax: 0.10.0
libtpu: 0.0.40
codegen_flags: <defaults>
</compile_context>

<pallas_src>
import numpy as np
import jax
import jax.numpy as jnp
from jax import lax
from jax.experimental import pallas as pl
from jax.experimental.pallas import tpu as pltpu

LANE = 128

# (kernel_size, stride, padding, C_out) for conv1..conv4 (mirrors the nn.Module)
CONV_CFG = [
    (8, 2, 3, 128),
    (4, 4, 2, 64),
    (4, 4, 2, 32),
    (4, 4, 0, 16),
]
FC_DIMS = [(16, 16), (16, 8), (8, 2)]

# Packed weight buffer row offsets (static, derived from CONV_CFG):
R_W0 = 0                  # conv1 folded weight: (8*c_in -> 128 rows) x 128 lanes
R_W1 = R_W0 + LANE        # conv2 folded weight: 4 per-tap chunks of 128 rows
R_W2 = R_W1 + 4 * LANE    # conv3 folded weight: 4 per-tap chunks
R_WH = R_W2 + 4 * LANE    # conv4 folded with fc1@fc2@fc3: 4 per-tap chunks
R_B = R_WH + 4 * LANE     # bias rows: b0, b1, b2, b_head
W_ROWS = R_B + 8


def _round_up(x, m):
    return -(-x // m) * m


# -----------------------------------------------------------------------------
# Static geometry
# -----------------------------------------------------------------------------
def _conv_geometry(c_in, length):
    geom = []
    l_cur, c_cur = length, c_in
    n = len(CONV_CFG)
    for li, (k, s, p, c_out) in enumerate(CONV_CFG):
        l_out = (l_cur + 2 * p - k) // s + 1
        l_cov = s * (l_out - 1) + k           # padded coords touched by real windows
        rows = min(l_cur, l_cov - p)          # real input rows inside the coverage
        if li == 0:
            # layer-0 im2col is built in the JAX wrapper (one window per output pos)
            pitch, off, pos = None, None, l_out
        else:
            # Per-batch block pitch in the padded scratch: a multiple of s so ONE
            # strided tap read spans all batches, and a multiple of 8*s so
            # pos = pitch/s (hence the next layer's value-slice starts) stays
            # 8-aligned. The last conv only needs pitch % s == 0.
            align = s if li == n - 1 else 8 * s
            pitch = _round_up(l_cov, align)
            off = (-p) % 8                    # shift so data rows start 8-aligned
            pos = pitch // s
        assert l_out <= pos
        geom.append(dict(k=k, s=s, p=p, c_in=c_cur, c_out=c_out, l_in=l_cur,
                         l_out=l_out, l_cov=l_cov, rows=rows, pitch=pitch,
                         off=off, pos=pos))
        l_cur, c_cur = l_out, c_out
    # downstream-consumption invariants (junk rows must never be read)
    for gp, gn in zip(geom[:-1], geom[1:]):
        assert gn["rows"] <= gp["l_out"] <= gp["pos"]
    return geom


# -----------------------------------------------------------------------------
# Fused forward kernel builder
# -----------------------------------------------------------------------------
def build_fused_forward(batch, c_in, length):
    geom = _conv_geometry(c_in, length)
    g0, gl = geom[0], geom[-1]
    assert g0["k"] * c_in <= LANE, "layer-0 patch width must fit in 128 lanes"
    assert gl["l_out"] == 1 and gl["pos"] == 1 and gl["c_out"] == FC_DIMS[0][0], (
        "input length must reduce to a length-1 feature map (use L=128)")

    conv_layers = geom[1:]                    # conv2..conv4 run inside the kernel
    w_bases = [R_W1, R_W2, R_WH]
    n_out = FC_DIMS[-1][1]

    def scratch_rows(g):
        max_read = g["off"] + (g["k"] - 1) + g["s"] * (batch * g["pos"] - 1) + 1
        return _round_up(max(batch * g["pitch"], max_read), 8)

    scratch_shapes = [pltpu.VMEM((scratch_rows(g), LANE), jnp.float32)
                      for g in conv_layers]

    def kernel(p0_ref, w_ref, out_ref, *scratch):
        # ---- conv1 (depthwise+pointwise folded): one lane-dense MXU matmul ----
        y = jnp.dot(p0_ref[...], w_ref[R_W0:R_W0 + LANE, :],
                    preferred_element_type=jnp.float32) + w_ref[R_B:R_B + 1, :]
        pos_prev = g0["pos"]

        # ---- conv2..conv4 ----
        for li, g in enumerate(conv_layers):
            s_ref = scratch[li]
            k, s, p = g["k"], g["s"], g["p"]
            pitch, off, rows, pos = g["pitch"], g["off"], g["rows"], g["pos"]
            trail = g["l_cov"] - p - rows

            # Zero ONLY the rows real windows read as conv padding (not the whole
            # buffer): an aligned 8-row slab in front of each batch block (covers
            # the alignment-offset rows + the p leading pad rows) plus the few
            # trailing pad rows. Data rows are overwritten by the scatter; junk
            # rows are never consumed downstream.
            for b in range(batch):
                if p > 0:
                    s_ref[b * pitch:b * pitch + 8, :] = jnp.zeros((8, LANE),
                                                                  jnp.float32)
                if trail > 0:
                    r0 = b * pitch + off + p + rows
                    s_ref[r0:r0 + trail, :] = jnp.zeros((trail, LANE), jnp.float32)

            # Scatter this layer's real input rows (8-aligned destinations).
            for b in range(batch):
                dst0 = b * pitch + off + p
                s_ref[dst0:dst0 + rows, :] = y[b * pos_prev:b * pos_prev + rows, :]

            # Accumulated per-tap matmuls: each strided tap read feeds the MXU
            # directly (no lane-axis concat / im2col materialization).
            m_rows = batch * pos
            wb = w_bases[li]
            acc = w_ref[R_B + li + 1:R_B + li + 2, :]       # bias row (broadcasts)
            for kk in range(k):
                tap = s_ref[pl.ds(off + kk, m_rows, stride=s), :]
                w_k = w_ref[wb + kk * LANE:wb + (kk + 1) * LANE, :]
                acc = acc + jnp.dot(tap, w_k, preferred_element_type=jnp.float32)
            y = acc
            pos_prev = pos

        # conv4 is already folded with fc1@fc2@fc3 into the head weights, so the
        # rows of `y` are per-batch logits (padded to 128 lanes, padding exactly 0).
        logits = y[:, :n_out]
        m = jnp.max(logits, axis=-1, keepdims=True)
        e = jnp.exp(logits - m)
        out_ref[...] = e / jnp.sum(e, axis=-1, keepdims=True)

    vmem = pl.BlockSpec(memory_space=pltpu.MemorySpace.VMEM)
    return pl.pallas_call(
        kernel,
        out_shape=jax.ShapeDtypeStruct((batch, n_out), jnp.float32),
        in_specs=[vmem, vmem],
        out_specs=vmem,
        scratch_shapes=scratch_shapes,
    )


# -----------------------------------------------------------------------------
# One-time parameter folding + lane-dense packing (runs OUTSIDE the jitted fwd)
# -----------------------------------------------------------------------------
def pack_params(params, input_channel):
    """Fold DW+PW convs, fold conv4 with fc1->fc2->fc3, lane-pad to 128 and pack
    everything into ONE (W_ROWS, 128) f32 buffer (all folds are exact: there is
    no nonlinearity anywhere inside the folded chains)."""
    to_np = lambda a: np.asarray(jax.device_get(a), np.float32)
    c = input_channel
    w_eff, b_eff = [], []
    for i, (k, _, _, c_out) in enumerate(CONV_CFG):
        wdw, bdw = to_np(params[f"dw{i}_w"]), to_np(params[f"dw{i}_b"])
        wpw, bpw = to_np(params[f"pw{i}_w"]), to_np(params[f"pw{i}_b"])
        w_eff.append((wdw[:, :, None] * wpw[None, :, :]).reshape(k * c, c_out))
        b_eff.append(bdw @ wpw + bpw)
        c = c_out

    # fold fc1 -> fc2 -> fc3
    w_fc, b_fc = to_np(params["fc0_w"]), to_np(params["fc0_b"])
    for i in range(1, len(FC_DIMS)):
        b_fc = b_fc @ to_np(params[f"fc{i}_w"]) + to_np(params[f"fc{i}_b"])
        w_fc = w_fc @ to_np(params[f"fc{i}_w"])

    # fold conv4 into the fc head (flatten at l_out==1 is the identity)
    w_head = w_eff[3] @ w_fc                  # (4*32, 2)
    b_head = b_eff[3] @ w_fc + b_fc           # (2,)

    packed = np.zeros((W_ROWS, LANE), np.float32)
    packed[R_W0:R_W0 + w_eff[0].shape[0], :w_eff[0].shape[1]] = w_eff[0]

    def place_taps(base, w, k, c_in_layer):
        for kk in range(k):
            chunk = w[kk * c_in_layer:(kk + 1) * c_in_layer]
            packed[base + kk * LANE:base + kk * LANE + c_in_layer,
                   :chunk.shape[1]] = chunk

    place_taps(R_W1, w_eff[1], CONV_CFG[1][0], CONV_CFG[0][3])   # c_in = 128
    place_taps(R_W2, w_eff[2], CONV_CFG[2][0], CONV_CFG[1][3])   # c_in = 64
    place_taps(R_WH, w_head,   CONV_CFG[3][0], CONV_CFG[2][3])   # c_in = 32

    packed[R_B + 0, :b_eff[0].shape[0]] = b_eff[0]
    packed[R_B + 1, :b_eff[1].shape[0]] = b_eff[1]
    packed[R_B + 2, :b_eff[2].shape[0]] = b_eff[2]
    packed[R_B + 3, :b_head.shape[0]] = b_head
    return jnp.asarray(packed)


@jax.jit
def cnn_eeg_forward(x_ncl, packed_w):
    """Forward pass matching CNNEEG.forward; x_ncl is (B, C, L) like PyTorch."""
    batch, c_in, length = x_ncl.shape
    geom = _conv_geometry(c_in, length)
    g0 = geom[0]
    k0, s0, p0 = g0["k"], g0["s"], g0["p"]

    # Layer-0 im2col in the wrapper (4 KiB input): (B, L, C) -> zero-padded,
    # lane-dense (B*l_out0, 128) patch matrix handed straight to the kernel.
    x_nlc = jnp.transpose(x_ncl, (0, 2, 1)).astype(jnp.float32)
    x_pad = jnp.pad(x_nlc, ((0, 0), (p0, p0), (0, 0)))
    win = jnp.arange(g0["l_out"])[:, None] * s0 + jnp.arange(k0)[None, :]
    patches = x_pad[:, win, :].reshape(batch, g0["l_out"], k0 * c_in)
    patches = jnp.pad(patches, ((0, 0), (0, 0), (0, LANE - k0 * c_in)))
    patches = patches.reshape(batch * g0["l_out"], LANE)

    fwd = build_fused_forward(batch, c_in, length)
    return fwd(patches, packed_w)


# -----------------------------------------------------------------------------
# Deterministic synthetic parameters (same shapes as the nn.Module)
# -----------------------------------------------------------------------------
def init_params(key, input_channel):
    params = {}
    c_in = input_channel
    for i, (k, _, _, c_out) in enumerate(CONV_CFG):
        key, k1, k2, k3, k4 = jax.random.split(key, 5)
        params[f"dw{i}_w"] = jax.random.normal(k1, (k, c_in), jnp.float32) / jnp.sqrt(k)
        params[f"dw{i}_b"] = jax.random.normal(k2, (c_in,), jnp.float32) * 0.1
        params[f"pw{i}_w"] = jax.random.normal(k3, (c_in, c_out), jnp.float32) / jnp.sqrt(c_in)
        params[f"pw{i}_b"] = jax.random.normal(k4, (c_out,), jnp.float32) * 0.1
        c_in = c_out
    for i, (fi, fo) in enumerate(FC_DIMS):
        key, k1, k2 = jax.random.split(key, 3)
        params[f"fc{i}_w"] = jax.random.normal(k1, (fi, fo), jnp.float32) / jnp.sqrt(fi)
        params[f"fc{i}_b"] = jax.random.normal(k2, (fo,), jnp.float32) * 0.1
    return params


# -----------------------------------------------------------------------------
# Independent pure-JAX reference (unfolded DW/PW convs + separate FC layers)
# -----------------------------------------------------------------------------
def reference_forward(x_ncl, params):
    hp = lax.Precision.HIGHEST
    y = x_ncl.astype(jnp.float32)
    for i, (k, s, p, _) in enumerate(CONV_CFG):
        c = y.shape[1]
        rhs = jnp.transpose(params[f"dw{i}_w"])[:, None, :]      # (C, 1, K)
        y = lax.conv_general_dilated(
            y, rhs, window_strides=(s,), padding=[(p, p)],
            dimension_numbers=("NCH", "OIH", "NCH"),
            feature_group_count=c, precision=hp)
        y = y + params[f"dw{i}_b"][None, :, None]
        y = jnp.einsum("bct,cd->bdt", y, params[f"pw{i}_w"], precision=hp)
        y = y + params[f"pw{i}_b"][None, :, None]
    flat = y.reshape(y.shape[0], -1)
    h = flat @ params["fc0_w"] + params["fc0_b"]
    h = h @ params["fc1_w"] + params["fc1_b"]
    h = h @ params["fc2_w"] + params["fc2_b"]
    return jax.nn.softmax(h, axis=1)


if __name__ == "__main__":
    key = jax.random.PRNGKey(0)
    key, xk, pk = jax.random.split(key, 3)

    B, C_IN, L = 2, 4, 128   # L=128 drives the conv stack to length 1 (fc1 expects 16 feats)
    x = jax.random.normal(xk, (B, C_IN, L), jnp.float32)
    params = init_params(pk, C_IN)

    packed = pack_params(params, C_IN)          # fold + pack once, outside jit
    out = jax.block_until_ready(cnn_eeg_forward(x, packed))
    ref = reference_forward(x, params)

    assert out.shape == (B, 2), out.shape
    assert jnp.allclose(jnp.sum(out, axis=1), 1.0, atol=1e-5)
    assert jnp.allclose(out, ref, rtol=5e-4, atol=1e-4), (out, ref)

    print("KERNEL_OK")
</pallas_src>

<mosaic_0001>
module attributes {stable_mosaic.version = 11 : i64} {
  func.func @kernel(%arg0: memref<128x128xf32, #tpu.memory_space<vmem>>, %arg1: memref<1672x128xf32, #tpu.memory_space<vmem>>, %arg2: memref<2x2xf32, #tpu.memory_space<vmem>>, %arg3: memref<200x128xf32, #tpu.memory_space<vmem>>, %arg4: memref<72x128xf32, #tpu.memory_space<vmem>>, %arg5: memref<8x128xf32, #tpu.memory_space<vmem>>) attributes {dimension_semantics = [], scalar_prefetch = 0 : i64, scratch_operands = 3 : i64, tpu.core_type = #tpu.core_type<tc>} {
    %c0 = arith.constant 0 : index
    %c0_0 = arith.constant 0 : index
    %0 = vector.load %arg0[%c0, %c0_0] : memref<128x128xf32, #tpu.memory_space<vmem>>, vector<128x128xf32>
    %c0_1 = arith.constant 0 : index
    %c0_2 = arith.constant 0 : index
    %1 = vector.load %arg1[%c0_1, %c0_2] : memref<1672x128xf32, #tpu.memory_space<vmem>>, vector<128x128xf32>
    %cst = arith.constant dense<0.000000e+00> : vector<128x128xf32>
    %2 = tpu.matmul %0, %1, %cst {dimension_numbers = #tpu.dot_dimension_numbers<[1], [0], [0], [1], [0, 0, 1, 1], [], []>} : vector<128x128xf32>, vector<128x128xf32>, vector<128x128xf32> -> vector<128x128xf32>
    %c1664 = arith.constant 1664 : index
    %c0_3 = arith.constant 0 : index
    %3 = vector.load %arg1[%c1664, %c0_3] : memref<1672x128xf32, #tpu.memory_space<vmem>>, vector<1x128xf32>
    %4 = vector.broadcast %3 : vector<1x128xf32> to vector<128x128xf32>
    %5 = arith.addf %2, %4 : vector<128x128xf32>
    %cst_4 = arith.constant 0.000000e+00 : f32
    %6 = vector.broadcast %cst_4 : f32 to vector<8x128xf32>
    %c0_5 = arith.constant 0 : index
    %c0_6 = arith.constant 0 : index
    %7 = vector.load %arg3[%c0_5, %c0_6] : memref<200x128xf32, #tpu.memory_space<vmem>>, vector<8x128xf32>
    tpu.vector_store %arg3[%c0_5, %c0_6], %6 {strides = array<i32>} : memref<200x128xf32, #tpu.memory_space<vmem>>, vector<8x128xf32>,
    %cst_7 = arith.constant 0.000000e+00 : f32
    %8 = vector.broadcast %cst_7 : f32 to vector<2x128xf32>
    %c72 = arith.constant 72 : index
    %c0_8 = arith.constant 0 : index
    %9 = vector.load %arg3[%c72, %c0_8] : memref<200x128xf32, #tpu.memory_space<vmem>>, vector<2x128xf32>
    tpu.vector_store %arg3[%c72, %c0_8], %8 {strides = array<i32>} : memref<200x128xf32, #tpu.memory_space<vmem>>, vector<2x128xf32>,
    %cst_9 = arith.constant 0.000000e+00 : f32
    %10 = vector.broadcast %cst_9 : f32 to vector<8x128xf32>
    %c96 = arith.constant 96 : index
    %c0_10 = arith.constant 0 : index
    %11 = vector.load %arg3[%c96, %c0_10] : memref<200x128xf32, #tpu.memory_space<vmem>>, vector<8x128xf32>
    tpu.vector_store %arg3[%c96, %c0_10], %10 {strides = array<i32>} : memref<200x128xf32, #tpu.memory_space<vmem>>, vector<8x128xf32>,
    %cst_11 = arith.constant 0.000000e+00 : f32
    %12 = vector.broadcast %cst_11 : f32 to vector<2x128xf32>
    %c168 = arith.constant 168 : index
    %c0_12 = arith.constant 0 : index
    %13 = vector.load %arg3[%c168, %c0_12] : memref<200x128xf32, #tpu.memory_space<vmem>>, vector<2x128xf32>
    tpu.vector_store %arg3[%c168, %c0_12], %12 {strides = array<i32>} : memref<200x128xf32, #tpu.memory_space<vmem>>, vector<2x128xf32>,
    %14 = vector.extract_strided_slice %5 {offsets = [0, 0], sizes = [64, 128], strides = [1, 1]} : vector<128x128xf32> to vector<64x128xf32>
    %c8 = arith.constant 8 : index
    %c0_13 = arith.constant 0 : index
    %15 = vector.load %arg3[%c8, %c0_13] : memref<200x128xf32, #tpu.memory_space<vmem>>, vector<64x128xf32>
    tpu.vector_store %arg3[%c8, %c0_13], %14 {strides = array<i32>} : memref<200x128xf32, #tpu.memory_space<vmem>>, vector<64x128xf32>,
    %16 = vector.extract_strided_slice %5 {offsets = [64, 0], sizes = [64, 128], strides = [1, 1]} : vector<128x128xf32> to vector<64x128xf32>
    %c104 = arith.constant 104 : index
    %c0_14 = arith.constant 0 : index
    %17 = vector.load %arg3[%c104, %c0_14] : memref<200x128xf32, #tpu.memory_space<vmem>>, vector<64x128xf32>
    tpu.vector_store %arg3[%c104, %c0_14], %16 {strides = array<i32>} : memref<200x128xf32, #tpu.memory_space<vmem>>, vector<64x128xf32>,
    %c1665 = arith.constant 1665 : index
    %c0_15 = arith.constant 0 : index
    %18 = vector.load %arg1[%c1665, %c0_15] : memref<1672x128xf32, #tpu.memory_space<vmem>>, vector<1x128xf32>
    %c6 = arith.constant 6 : index
    %c0_16 = arith.constant 0 : index
    %19 = tpu.strided_load %arg3[%c6, %c0_16] {strides = array<i32: 4, 1>} : memref<200x128xf32, #tpu.memory_space<vmem>>, vector<48x128xf32>
    %c128 = arith.constant 128 : index
    %c0_17 = arith.constant 0 : index
    %20 = vector.load %arg1[%c128, %c0_17] : memref<1672x128xf32, #tpu.memory_space<vmem>>, vector<128x128xf32>
    %cst_18 = arith.constant dense<0.000000e+00> : vector<48x128xf32>
    %21 = tpu.matmul %19, %20, %cst_18 {dimension_numbers = #tpu.dot_dimension_numbers<[1], [0], [0], [1], [0, 0, 1, 1], [], []>} : vector<48x128xf32>, vector<128x128xf32>, vector<48x128xf32> -> vector<48x128xf32>
    %22 = vector.broadcast %18 : vector<1x128xf32> to vector<48x128xf32>
    %23 = arith.addf %22, %21 : vector<48x128xf32>
    %c7 = arith.constant 7 : index
    %c0_19 = arith.constant 0 : index
    %24 = tpu.strided_load %arg3[%c7, %c0_19] {strides = array<i32: 4, 1>} : memref<200x128xf32, #tpu.memory_space<vmem>>, vector<48x128xf32>
    %c256 = arith.constant 256 : index
    %c0_20 = arith.constant 0 : index
    %25 = vector.load %arg1[%c256, %c0_20] : memref<1672x128xf32, #tpu.memory_space<vmem>>, vector<128x128xf32>
    %cst_21 = arith.constant dense<0.000000e+00> : vector<48x128xf32>
    %26 = tpu.matmul %24, %25, %cst_21 {dimension_numbers = #tpu.dot_dimension_numbers<[1], [0], [0], [1], [0, 0, 1, 1], [], []>} : vector<48x128xf32>, vector<128x128xf32>, vector<48x128xf32> -> vector<48x128xf32>
    %27 = arith.addf %23, %26 : vector<48x128xf32>
    %c8_22 = arith.constant 8 : index
    %c0_23 = arith.constant 0 : index
    %28 = tpu.strided_load %arg3[%c8_22, %c0_23] {strides = array<i32: 4, 1>} : memref<200x128xf32, #tpu.memory_space<vmem>>, vector<48x128xf32>
    %c384 = arith.constant 384 : index
    %c0_24 = arith.constant 0 : index
    %29 = vector.load %arg1[%c384, %c0_24] : memref<1672x128xf32, #tpu.memory_space<vmem>>, vector<128x128xf32>
    %cst_25 = arith.constant dense<0.000000e+00> : vector<48x128xf32>
    %30 = tpu.matmul %28, %29, %cst_25 {dimension_numbers = #tpu.dot_dimension_numbers<[1], [0], [0], [1], [0, 0, 1, 1], [], []>} : vector<48x128xf32>, vector<128x128xf32>, vector<48x128xf32> -> vector<48x128xf32>
    %31 = arith.addf %27, %30 : vector<48x128xf32>
    %c9 = arith.constant 9 : index
    %c0_26 = arith.constant 0 : index
    %32 = tpu.strided_load %arg3[%c9, %c0_26] {strides = array<i32: 4, 1>} : memref<200x128xf32, #tpu.memory_space<vmem>>, vector<48x128xf32>
    %c512 = arith.constant 512 : index
    %c0_27 = arith.constant 0 : index
    %33 = vector.load %arg1[%c512, %c0_27] : memref<1672x128xf32, #tpu.memory_space<vmem>>, vector<128x128xf32>
    %cst_28 = arith.constant dense<0.000000e+00> : vector<48x128xf32>
    %34 = tpu.matmul %32, %33, %cst_28 {dimension_numbers = #tpu.dot_dimension_numbers<[1], [0], [0], [1], [0, 0, 1, 1], [], []>} : vector<48x128xf32>, vector<128x128xf32>, vector<48x128xf32> -> vector<48x128xf32>
    %35 = arith.addf %31, %34 : vector<48x128xf32>
    %cst_29 = arith.constant 0.000000e+00 : f32
    %36 = vector.broadcast %cst_29 : f32 to vector<8x128xf32>
    %c0_30 = arith.constant 0 : index
    %c0_31 = arith.constant 0 : index
    %37 = vector.load %arg4[%c0_30, %c0_31] : memref<72x128xf32, #tpu.memory_space<vmem>>, vector<8x128xf32>
    tpu.vector_store %arg4[%c0_30, %c0_31], %36 {strides = array<i32>} : memref<72x128xf32, #tpu.memory_space<vmem>>, vector<8x128xf32>,
    %cst_32 = arith.constant 0.000000e+00 : f32
    %38 = vector.broadcast %cst_32 : f32 to vector<1x128xf32>
    %c25 = arith.constant 25 : index
    %c0_33 = arith.constant 0 : index
    %39 = vector.load %arg4[%c25, %c0_33] : memref<72x128xf32, #tpu.memory_space<vmem>>, vector<1x128xf32>
    tpu.vector_store %arg4[%c25, %c0_33], %38 {strides = array<i32>} : memref<72x128xf32, #tpu.memory_space<vmem>>, vector<1x128xf32>,
    %cst_34 = arith.constant 0.000000e+00 : f32
    %40 = vector.broadcast %cst_34 : f32 to vector<8x128xf32>
    %c32 = arith.constant 32 : index
    %c0_35 = arith.constant 0 : index
    %41 = vector.load %arg4[%c32, %c0_35] : memref<72x128xf32, #tpu.memory_space<vmem>>, vector<8x128xf32>
    tpu.vector_store %arg4[%c32, %c0_35], %40 {strides = array<i32>} : memref<72x128xf32, #tpu.memory_space<vmem>>, vector<8x128xf32>,
    %cst_36 = arith.constant 0.000000e+00 : f32
    %42 = vector.broadcast %cst_36 : f32 to vector<1x128xf32>
    %c57 = arith.constant 57 : index
    %c0_37 = arith.constant 0 : index
    %43 = vector.load %arg4[%c57, %c0_37] : memref<72x128xf32, #tpu.memory_space<vmem>>, vector<1x128xf32>
    tpu.vector_store %arg4[%c57, %c0_37], %42 {strides = array<i32>} : memref<72x128xf32, #tpu.memory_space<vmem>>, vector<1x128xf32>,
    %44 = vector.extract_strided_slice %35 {offsets = [0, 0], sizes = [17, 128], strides = [1, 1]} : vector<48x128xf32> to vector<17x128xf32>
    %c8_38 = arith.constant 8 : index
    %c0_39 = arith.constant 0 : index
    %45 = vector.load %arg4[%c8_38, %c0_39] : memref<72x128xf32, #tpu.memory_space<vmem>>, vector<17x128xf32>
    tpu.vector_store %arg4[%c8_38, %c0_39], %44 {strides = array<i32>} : memref<72x128xf32, #tpu.memory_space<vmem>>, vector<17x128xf32>,
    %46 = vector.extract_strided_slice %35 {offsets = [24, 0], sizes = [17, 128], strides = [1, 1]} : vector<48x128xf32> to vector<17x128xf32>
    %c40 = arith.constant 40 : index
    %c0_40 = arith.constant 0 : index
    %47 = vector.load %arg4[%c40, %c0_40] : memref<72x128xf32, #tpu.memory_space<vmem>>, vector<17x128xf32>
    tpu.vector_store %arg4[%c40, %c0_40], %46 {strides = array<i32>} : memref<72x128xf32, #tpu.memory_space<vmem>>, vector<17x128xf32>,
    %c1666 = arith.constant 1666 : index
    %c0_41 = arith.constant 0 : index
    %48 = vector.load %arg1[%c1666, %c0_41] : memref<1672x128xf32, #tpu.memory_space<vmem>>, vector<1x128xf32>
    %c6_42 = arith.constant 6 : index
    %c0_43 = arith.constant 0 : index
    %49 = tpu.strided_load %arg4[%c6_42, %c0_43] {strides = array<i32: 4, 1>} : memref<72x128xf32, #tpu.memory_space<vmem>>, vector<16x128xf32>
    %c640 = arith.constant 640 : index
    %c0_44 = arith.constant 0 : index
    %50 = vector.load %arg1[%c640, %c0_44] : memref<1672x128xf32, #tpu.memory_space<vmem>>, vector<128x128xf32>
    %cst_45 = arith.constant dense<0.000000e+00> : vector<16x128xf32>
    %51 = tpu.matmul %49, %50, %cst_45 {dimension_numbers = #tpu.dot_dimension_numbers<[1], [0], [0], [1], [0, 0, 1, 1], [], []>} : vector<16x128xf32>, vector<128x128xf32>, vector<16x128xf32> -> vector<16x128xf32>
    %52 = vector.broadcast %48 : vector<1x128xf32> to vector<16x128xf32>
    %53 = arith.addf %52, %51 : vector<16x128xf32>
    %c7_46 = arith.constant 7 : index
    %c0_47 = arith.constant 0 : index
    %54 = tpu.strided_load %arg4[%c7_46, %c0_47] {strides = array<i32: 4, 1>} : memref<72x128xf32, #tpu.memory_space<vmem>>, vector<16x128xf32>
    %c768 = arith.constant 768 : index
    %c0_48 = arith.constant 0 : index
    %55 = vector.load %arg1[%c768, %c0_48] : memref<1672x128xf32, #tpu.memory_space<vmem>>, vector<128x128xf32>
    %cst_49 = arith.constant dense<0.000000e+00> : vector<16x128xf32>
    %56 = tpu.matmul %54, %55, %cst_49 {dimension_numbers = #tpu.dot_dimension_numbers<[1], [0], [0], [1], [0, 0, 1, 1], [], []>} : vector<16x128xf32>, vector<128x128xf32>, vector<16x128xf32> -> vector<16x128xf32>
    %57 = arith.addf %53, %56 : vector<16x128xf32>
    %c8_50 = arith.constant 8 : index
    %c0_51 = arith.constant 0 : index
    %58 = tpu.strided_load %arg4[%c8_50, %c0_51] {strides = array<i32: 4, 1>} : memref<72x128xf32, #tpu.memory_space<vmem>>, vector<16x128xf32>
    %c896 = arith.constant 896 : index
    %c0_52 = arith.constant 0 : index
    %59 = vector.load %arg1[%c896, %c0_52] : memref<1672x128xf32, #tpu.memory_space<vmem>>, vector<128x128xf32>
    %cst_53 = arith.constant dense<0.000000e+00> : vector<16x128xf32>
    %60 = tpu.matmul %58, %59, %cst_53 {dimension_numbers = #tpu.dot_dimension_numbers<[1], [0], [0], [1], [0, 0, 1, 1], [], []>} : vector<16x128xf32>, vector<128x128xf32>, vector<16x128xf32> -> vector<16x128xf32>
    %61 = arith.addf %57, %60 : vector<16x128xf32>
    %c9_54 = arith.constant 9 : index
    %c0_55 = arith.constant 0 : index
    %62 = tpu.strided_load %arg4[%c9_54, %c0_55] {strides = array<i32: 4, 1>} : memref<72x128xf32, #tpu.memory_space<vmem>>, vector<16x128xf32>
    %c1024 = arith.constant 1024 : index
    %c0_56 = arith.constant 0 : index
    %63 = vector.load %arg1[%c1024, %c0_56] : memref<1672x128xf32, #tpu.memory_space<vmem>>, vector<128x128xf32>
    %cst_57 = arith.constant dense<0.000000e+00> : vector<16x128xf32>
    %64 = tpu.matmul %62, %63, %cst_57 {dimension_numbers = #tpu.dot_dimension_numbers<[1], [0], [0], [1], [0, 0, 1, 1], [], []>} : vector<16x128xf32>, vector<128x128xf32>, vector<16x128xf32> -> vector<16x128xf32>
    %65 = arith.addf %61, %64 : vector<16x128xf32>
    %66 = vector.extract_strided_slice %65 {offsets = [0, 0], sizes = [4, 128], strides = [1, 1]} : vector<16x128xf32> to vector<4x128xf32>
    %c0_58 = arith.constant 0 : index
    %c0_59 = arith.constant 0 : index
    %67 = vector.load %arg5[%c0_58, %c0_59] : memref<8x128xf32, #tpu.memory_space<vmem>>, vector<4x128xf32>
    tpu.vector_store %arg5[%c0_58, %c0_59], %66 {strides = array<i32>} : memref<8x128xf32, #tpu.memory_space<vmem>>, vector<4x128xf32>,
    %68 = vector.extract_strided_slice %65 {offsets = [8, 0], sizes = [4, 128], strides = [1, 1]} : vector<16x128xf32> to vector<4x128xf32>
    %c4 = arith.constant 4 : index
    %c0_60 = arith.constant 0 : index
    %69 = vector.load %arg5[%c4, %c0_60] : memref<8x128xf32, #tpu.memory_space<vmem>>, vector<4x128xf32>
    tpu.vector_store %arg5[%c4, %c0_60], %68 {strides = array<i32>} : memref<8x128xf32, #tpu.memory_space<vmem>>, vector<4x128xf32>,
    %c1667 = arith.constant 1667 : index
    %c0_61 = arith.constant 0 : index
    %70 = vector.load %arg1[%c1667, %c0_61] : memref<1672x128xf32, #tpu.memory_space<vmem>>, vector<1x128xf32>
    %c0_62 = arith.constant 0 : index
    %c0_63 = arith.constant 0 : index
    %71 = tpu.strided_load %arg5[%c0_62, %c0_63] {strides = array<i32: 4, 1>} : memref<8x128xf32, #tpu.memory_space<vmem>>, vector<2x128xf32>
    %c1152 = arith.constant 1152 : index
    %c0_64 = arith.constant 0 : index
    %72 = vector.load %arg1[%c1152, %c0_64] : memref<1672x128xf32, #tpu.memory_space<vmem>>, vector<128x128xf32>
    %cst_65 = arith.constant dense<0.000000e+00> : vector<2x128xf32>
    %73 = tpu.matmul %71, %72, %cst_65 {dimension_numbers = #tpu.dot_dimension_numbers<[1], [0], [0], [1], [0, 0, 1, 1], [], []>} : vector<2x128xf32>, vector<128x128xf32>, vector<2x128xf32> -> vector<2x128xf32>
    %74 = vector.broadcast %70 : vector<1x128xf32> to vector<2x128xf32>
    %75 = arith.addf %74, %73 : vector<2x128xf32>
    %c1 = arith.constant 1 : index
    %c0_66 = arith.constant 0 : index
    %76 = tpu.strided_load %arg5[%c1, %c0_66] {strides = array<i32: 4, 1>} : memref<8x128xf32, #tpu.memory_space<vmem>>, vector<2x128xf32>
    %c1280 = arith.constant 1280 : index
    %c0_67 = arith.constant 0 : index
    %77 = vector.load %arg1[%c1280, %c0_67] : memref<1672x128xf32, #tpu.memory_space<vmem>>, vector<128x128xf32>
    %cst_68 = arith.constant dense<0.000000e+00> : vector<2x128xf32>
    %78 = tpu.matmul %76, %77, %cst_68 {dimension_numbers = #tpu.dot_dimension_numbers<[1], [0], [0], [1], [0, 0, 1, 1], [], []>} : vector<2x128xf32>, vector<128x128xf32>, vector<2x128xf32> -> vector<2x128xf32>
    %79 = arith.addf %75, %78 : vector<2x128xf32>
    %c2 = arith.constant 2 : index
    %c0_69 = arith.constant 0 : index
    %80 = tpu.strided_load %arg5[%c2, %c0_69] {strides = array<i32: 4, 1>} : memref<8x128xf32, #tpu.memory_space<vmem>>, vector<2x128xf32>
    %c1408 = arith.constant 1408 : index
    %c0_70 = arith.constant 0 : index
    %81 = vector.load %arg1[%c1408, %c0_70] : memref<1672x128xf32, #tpu.memory_space<vmem>>, vector<128x128xf32>
    %cst_71 = arith.constant dense<0.000000e+00> : vector<2x128xf32>
    %82 = tpu.matmul %80, %81, %cst_71 {dimension_numbers = #tpu.dot_dimension_numbers<[1], [0], [0], [1], [0, 0, 1, 1], [], []>} : vector<2x128xf32>, vector<128x128xf32>, vector<2x128xf32> -> vector<2x128xf32>
    %83 = arith.addf %79, %82 : vector<2x128xf32>
    %c3 = arith.constant 3 : index
    %c0_72 = arith.constant 0 : index
    %84 = tpu.strided_load %arg5[%c3, %c0_72] {strides = array<i32: 4, 1>} : memref<8x128xf32, #tpu.memory_space<vmem>>, vector<2x128xf32>
    %c1536 = arith.constant 1536 : index
    %c0_73 = arith.constant 0 : index
    %85 = vector.load %arg1[%c1536, %c0_73] : memref<1672x128xf32, #tpu.memory_space<vmem>>, vector<128x128xf32>
    %cst_74 = arith.constant dense<0.000000e+00> : vector<2x128xf32>
    %86 = tpu.matmul %84, %85, %cst_74 {dimension_numbers = #tpu.dot_dimension_numbers<[1], [0], [0], [1], [0, 0, 1, 1], [], []>} : vector<2x128xf32>, vector<128x128xf32>, vector<2x128xf32> -> vector<2x128xf32>
    %87 = arith.addf %83, %86 : vector<2x128xf32>
    %88 = vector.extract_strided_slice %87 {offsets = [0, 0], sizes = [2, 2], strides = [1, 1]} : vector<2x128xf32> to vector<2x2xf32>
    %cst_75 = arith.constant dense<0xFF800000> : vector<2xf32>
    %89 = vector.multi_reduction <maximumf>, %88, %cst_75 [1] : vector<2x2xf32> to vector<2xf32>
    %90 = vector.shape_cast %89 : vector<2xf32> to vector<2x1xf32>
    %91 = vector.broadcast %90 : vector<2x1xf32> to vector<2x2xf32>
    %92 = arith.subf %88, %91 : vector<2x2xf32>
    %93 = math.exp %92 : vector<2x2xf32>
    %cst_76 = arith.constant dense<0.000000e+00> : vector<2xf32>
    %94 = vector.multi_reduction <add>, %93, %cst_76 [1] : vector<2x2xf32> to vector<2xf32>
    %95 = vector.shape_cast %94 : vector<2xf32> to vector<2x1xf32>
    %96 = vector.broadcast %95 : vector<2x1xf32> to vector<2x2xf32>
    %97 = arith.divf %93, %96 : vector<2x2xf32>
    %c0_77 = arith.constant 0 : index
    %c0_78 = arith.constant 0 : index
    %98 = vector.load %arg2[%c0_77, %c0_78] : memref<2x2xf32, #tpu.memory_space<vmem>>, vector<2x2xf32>
    tpu.vector_store %arg2[%c0_77, %c0_78], %97 {strides = array<i32>} : memref<2x2xf32, #tpu.memory_space<vmem>>, vector<2x2xf32>,
    return
  }
}

</mosaic_0001>

<bundles_post_ra>
// kernel: cnn_eeg_forward.1
= control target key start
LH: loop header
LB: loop body
LE: loop exit
PB: predicated region body
PF: predicated region fallthrough
CT: control target
= control target key end

     0   :  { %s1589_s0 = inlined_call_operand.vmem [shape: f32[128,128], index: 0, kind: input, shape index: {}]   ;;  %s1590_s1 = inlined_call_operand.vmem [shape: f32[1672,128], index: 1, kind: input, shape index: {}]   ;;  %s1591_s2 = inlined_call_operand.hbm [shape: f32[2,2], index: 2, kind: output, shape index: {}]  }
   0x1   :  { %v43_v0 = vld [vmem:[%s1590_s1 + $0x78] sm:$0xff]  ;;  %v42_v1 = vld [vmem:[%s1590_s1 + $0x70] sm:$0xff]  ;;  %v41_v2 = vld [vmem:[%s1590_s1 + $0x68] sm:$0xff] }
   0x2   :  { %46 = vmatpush.msra.mxu0 %v43_v0  ;;  %v40_v3 = vld [vmem:[%s1590_s1 + $0x60] sm:$0xff]  ;;  %v39_v4 = vld [vmem:[%s1590_s1 + $0x58] sm:$0xff] }
   0x4   :  { %47 = vmatpush.msra.mxu0 %v42_v1 }
   0x6   :  { %48 = vmatpush.msra.mxu0 %v41_v2 }
   0x8   :  { %49 = vmatpush.msra.mxu0 %v40_v3 }
   0x9   :  { %7 = vsyncpa [#allocation6], 0  ;;  %v38_v5 = vld [vmem:[%s1590_s1 + $0x50] sm:$0xff]  ;;  %v37_v6 = vld [vmem:[%s1590_s1 + $0x48] sm:$0xff]  ;;  %vm760_vm0 = vcmask 9216   ;;  %s793_s8 = sshll.u32 %s1591_s2, 4  ;;  %s794_s8 = int_to_ptr.hbm [resolvable:$true] %s793_s8 }
   0xa   :  { %50 = vmatpush.msra.mxu0 %v39_v4  ;;  %v36_v7 = vld [vmem:[%s1590_s1 + $0x40] sm:$0xff]  ;;  %v35_v8 = vld [vmem:[%s1590_s1 + $0x38] sm:$0xff]  ;;  %v34_v9 = vld [vmem:[%s1590_s1 + $0x30] sm:$0xff] }
   0xb   :  { %v33_v10 = vld [vmem:[%s1590_s1 + $0x28] sm:$0xff]  ;;  %v32_v11 = vld [vmem:[%s1590_s1 + $0x20] sm:$0xff]  ;;  %v31_v12 = vld [vmem:[%s1590_s1 + $0x18] sm:$0xff] }
   0xc   :  { %51 = vmatpush.msra.mxu0 %v38_v5  ;;  %v30_v13 = vld [vmem:[%s1590_s1 + $0x10] sm:$0xff]  ;;  %v29_v14 = vld [vmem:[%s1590_s1 + $0x8] sm:$0xff]  ;;  %v28_v15 = vld [vmem:[%s1590_s1] sm:$0xff] }
   0xd   :  { %v12_v16 = vld [vmem:[%s1589_s0] sm:$0xff]  ;;  %v13_v17 = vld [vmem:[%s1589_s0 + $0x8] sm:$0xff]  ;;  %v14_v18 = vld [vmem:[%s1589_s0 + $0x10] sm:$0xff] }
   0xe   :  { %52 = vmatpush.msra.mxu0 %v37_v6  ;;  %v15_v19 = vld [vmem:[%s1589_s0 + $0x18] sm:$0xff]  ;;  %v16_v20 = vld [vmem:[%s1589_s0 + $0x20] sm:$0xff]  ;;  %v17_v21 = vld [vmem:[%s1589_s0 + $0x28] sm:$0xff] }
   0xf   :  { %v18_v22 = vld [vmem:[%s1589_s0 + $0x30] sm:$0xff]  ;;  %v19_v23 = vld [vmem:[%s1589_s0 + $0x38] sm:$0xff]  ;;  %v20_v24 = vld [vmem:[%s1589_s0 + $0x40] sm:$0xff] }
  0x10   :  { %53 = vmatpush.msra.mxu0 %v36_v7  ;;  %v21_v25 = vld [vmem:[%s1589_s0 + $0x48] sm:$0xff]  ;;  %v22_v26 = vld [vmem:[%s1589_s0 + $0x50] sm:$0xff]  ;;  %v23_v27 = vld [vmem:[%s1589_s0 + $0x58] sm:$0xff]  ;;  %v838_v7 = vmov 0.0  }
  0x11   :  { %v24_v28 = vld [vmem:[%s1589_s0 + $0x60] sm:$0xff]  ;;  %v159_v29 = vld [vmem:[%s1590_s1 + $0xf8] sm:$0xff]  ;;  %v158_v32 = vld [vmem:[%s1590_s1 + $0xf0] sm:$0xff]  ;;  %111 = vst [vmem:[#allocation2] sm:$0xff] %v838_v7 }
  0x12   :  { %54 = vmatpush.msra.mxu0 %v35_v8  ;;  %v229_v30 = vld [vmem:[%s1590_s1 + $0x178] sm:$0xff]  ;;  %160 = vmatpush.msra.mxu1 %v159_v29  ;;  %v228_v33 = vld [vmem:[%s1590_s1 + $0x170] sm:$0xff]  ;;  %v157_v35 = vld [vmem:[%s1590_s1 + $0xe8] sm:$0xff]  ;;  %112 = vst [vmem:[#allocation2 + $0x48] sm:$0x3] %v838_v7 }
  0x13   :  { %v298_v31 = vld [vmem:[%s1590_s1 + $0x1f8] sm:$0xff]  ;;  %230 = vmatpush.msra.mxu2 %v229_v30  ;;  %v297_v34 = vld [vmem:[%s1590_s1 + $0x1f0] sm:$0xff]  ;;  %v227_v36 = vld [vmem:[%s1590_s1 + $0x168] sm:$0xff]  ;;  %113 = vst [vmem:[#allocation2 + $0x60] sm:$0xff] %v838_v7 }
  0x14   :  { %55 = vmatpush.msra.mxu0 %v34_v9  ;;  %299 = vmatpush.msra.mxu3 %v298_v31  ;;  %v296_v37 = vld [vmem:[%s1590_s1 + $0x1e8] sm:$0xff]  ;;  %v156_v39 = vld [vmem:[%s1590_s1 + $0xe0] sm:$0xff]  ;;  %v155_v42 = vld [vmem:[%s1590_s1 + $0xd8] sm:$0xff]  ;;  %114 = vst [vmem:[#allocation2 + $0xa8] sm:$0x3] %v838_v7 }
  0x15   :  { %161 = vmatpush.msra.mxu1 %v158_v32  ;;  %231 = vmatpush.msra.mxu2 %v228_v33  ;;  %v25_v38 = vld [vmem:[%s1589_s0 + $0x68] sm:$0xff]  ;;  %v226_v40 = vld [vmem:[%s1590_s1 + $0x160] sm:$0xff]  ;;  %v225_v43 = vld [vmem:[%s1590_s1 + $0x158] sm:$0xff]  ;;  %409 = vst [vmem:[#allocation3] sm:$0xff] %v838_v7 }
  0x16   :  { %56 = vmatpush.msra.mxu0 %v33_v10  ;;  %300 = vmatpush.msra.mxu3 %v297_v34  ;;  %v295_v41 = vld [vmem:[%s1590_s1 + $0x1e0] sm:$0xff]  ;;  %v294_v44 = vld [vmem:[%s1590_s1 + $0x1d8] sm:$0xff]  ;;  %v154_v45 = vld [vmem:[%s1590_s1 + $0xd0] sm:$0xff]  ;;  %410 = vst [vmem:[#allocation3 + $0x19] sm:$0x1] %v838_v7 }
  0x17   :  { %162 = vmatpush.msra.mxu1 %v157_v35  ;;  %232 = vmatpush.msra.mxu2 %v227_v36  ;;  %v224_v46 = vld [vmem:[%s1590_s1 + $0x150] sm:$0xff]  ;;  %v153_v48 = vld [vmem:[%s1590_s1 + $0xc8] sm:$0xff]  ;;  %v152_v52 = vld [vmem:[%s1590_s1 + $0xc0] sm:$0xff]  ;;  %411 = vst [vmem:[#allocation3 + $0x20] sm:$0xff] %v838_v7 }
  0x18   :  { %57 = vmatpush.msra.mxu0 %v32_v11  ;;  %301 = vmatpush.msra.mxu3 %v296_v37  ;;  %v293_v47 = vld [vmem:[%s1590_s1 + $0x1d0] sm:$0xff]  ;;  %v223_v49 = vld [vmem:[%s1590_s1 + $0x148] sm:$0xff]  ;;  %v222_v53 = vld [vmem:[%s1590_s1 + $0x140] sm:$0xff]  ;;  %412 = vst [vmem:[#allocation3 + $0x39] sm:$0x1] %v838_v7 }
  0x19   :  { %163 = vmatpush.msra.mxu1 %v156_v39  ;;  %233 = vmatpush.msra.mxu2 %v226_v40  ;;  %v292_v50 = vld [vmem:[%s1590_s1 + $0x1c8] sm:$0xff]  ;;  %v26_v51 = vld [vmem:[%s1589_s0 + $0x70] sm:$0xff]  ;;  %v291_v54 = vld [vmem:[%s1590_s1 + $0x1c0] sm:$0xff] }
  0x1a   :  { %58 = vmatpush.msra.mxu0 %v31_v12  ;;  %302 = vmatpush.msra.mxu3 %v295_v41  ;;  %v151_v55 = vld [vmem:[%s1590_s1 + $0xb8] sm:$0xff]  ;;  %v150_v58 = vld [vmem:[%s1590_s1 + $0xb0] sm:$0xff]  ;;  %v149_v61 = vld [vmem:[%s1590_s1 + $0xa8] sm:$0xff] }
  0x1b   :  { %164 = vmatpush.msra.mxu1 %v155_v42  ;;  %234 = vmatpush.msra.mxu2 %v225_v43  ;;  %v221_v56 = vld [vmem:[%s1590_s1 + $0x138] sm:$0xff]  ;;  %v220_v59 = vld [vmem:[%s1590_s1 + $0x130] sm:$0xff]  ;;  %v219_v62 = vld [vmem:[%s1590_s1 + $0x128] sm:$0xff] }
  0x1c   :  { %59 = vmatpush.msra.mxu0 %v30_v13  ;;  %303 = vmatpush.msra.mxu3 %v294_v44  ;;  %v290_v57 = vld [vmem:[%s1590_s1 + $0x1b8] sm:$0xff]  ;;  %v289_v60 = vld [vmem:[%s1590_s1 + $0x1b0] sm:$0xff]  ;;  %v288_v63 = vld [vmem:[%s1590_s1 + $0x1a8] sm:$0xff] }
  0x1d   :  { %165 = vmatpush.msra.mxu1 %v154_v45  ;;  %235 = vmatpush.msra.mxu2 %v224_v46  ;;  %v27_v0 = vld [vmem:[%s1589_s0 + $0x78] sm:$0xff]  ;;  %v148_v1 = vld [vmem:[%s1590_s1 + $0xa0] sm:$0xff]  ;;  %v146_v8 = vld [vmem:[%s1590_s1 + $0x90] sm:$0xff] }
  0x1e   :  { %60 = vmatpush.msra.mxu0 %v29_v14  ;;  %304 = vmatpush.msra.mxu3 %v293_v47  ;;  %v218_v2 = vld [vmem:[%s1590_s1 + $0x120] sm:$0xff]  ;;  %v147_v4 = vld [vmem:[%s1590_s1 + $0x98] sm:$0xff]  ;;  %v216_v9 = vld [vmem:[%s1590_s1 + $0x110] sm:$0xff] }
  0x1f   :  { %166 = vmatpush.msra.mxu1 %v153_v48  ;;  %236 = vmatpush.msra.mxu2 %v223_v49  ;;  %v287_v3 = vld [vmem:[%s1590_s1 + $0x1a0] sm:$0xff]  ;;  %v217_v5 = vld [vmem:[%s1590_s1 + $0x118] sm:$0xff]  ;;  %v285_v10 = vld [vmem:[%s1590_s1 + $0x190] sm:$0xff] }
  0x20   :  { %61 = vmatpush.msra.mxu0 %v28_v15  ;;  %305 = vmatpush.msra.mxu3 %v292_v50  ;;  %v286_v6 = vld [vmem:[%s1590_s1 + $0x198] sm:$0xff]  ;;  %v1080_v11 = vld [vmem:[%s1590_s1 + $0x680] ss:$0 sm:$0xff]  ;;  %v145_v12 = vld [vmem:[%s1590_s1 + $0x88] sm:$0xff] }
  0x21   :  { %62 = vmatmul.f32.vlgmr.msra.gmra.mxu0 %v12_v16  ;;  %167 = vmatpush.msra.mxu1 %v152_v52  ;;  %v215_v13 = vld [vmem:[%s1590_s1 + $0x108] sm:$0xff]  ;;  %v367_v42 = vld [vmem:[%s1590_s1 + $0x278] sm:$0xff]  ;;  %v366_v43 = vld [vmem:[%s1590_s1 + $0x270] sm:$0xff] }
  0x22   :  { %237 = vmatpush.msra.mxu2 %v222_v53  ;;  %306 = vmatpush.msra.mxu3 %v291_v54  ;;  %v284_v14 = vld [vmem:[%s1590_s1 + $0x188] sm:$0xff]  ;;  %v364_v50 = vld [vmem:[%s1590_s1 + $0x260] sm:$0xff]  ;;  %v362_v54 = vld [vmem:[%s1590_s1 + $0x250] sm:$0xff] }
  0x23   :  { %168 = vmatpush.msra.mxu1 %v151_v55  ;;  %v276_v46 = vld [vmem:[#allocation2 + $0x48] ss:$4 sm:$0xff] }
  0x24   :  { %238 = vmatpush.msra.mxu2 %v221_v56  ;;  %307 = vmatpush.msra.mxu3 %v290_v57  ;;  %v365_v49 = vld [vmem:[%s1590_s1 + $0x268] sm:$0xff] }
  0x25   :  { %169 = vmatpush.msra.mxu1 %v150_v58  ;;  %v361_v55 = vld [vmem:[%s1590_s1 + $0x248] sm:$0xff]  ;;  %v360_v58 = vld [vmem:[%s1590_s1 + $0x240] sm:$0xff] }
  0x26   :  { %239 = vmatpush.msra.mxu2 %v220_v59  ;;  %308 = vmatpush.msra.mxu3 %v289_v60  ;;  %v359_v59 = vld [vmem:[%s1590_s1 + $0x238] sm:$0xff]  ;;  %v358_v60 = vld [vmem:[%s1590_s1 + $0x230] sm:$0xff] }
  0x27   :  { %170 = vmatpush.msra.mxu1 %v149_v61  ;;  %v357_v61 = vld [vmem:[%s1590_s1 + $0x228] sm:$0xff] }
  0x28   :  { %240 = vmatpush.msra.mxu2 %v219_v62  ;;  %309 = vmatpush.msra.mxu3 %v288_v63 }
  0x29   :  { %65 = vmatmul.f32.gmra.mxu0 %v13_v17  ;;  %171 = vmatpush.msra.mxu1 %v148_v1  ;;  %v144_v17 = vld [vmem:[%s1590_s1 + $0x80] sm:$0xff] }
  0x2a   :  { %241 = vmatpush.msra.mxu2 %v218_v2  ;;  %310 = vmatpush.msra.mxu3 %v287_v3  ;;  %v356_v3 = vld [vmem:[%s1590_s1 + $0x220] sm:$0xff] }
  0x2b   :  { %172 = vmatpush.msra.mxu1 %v147_v4  ;;  %v355_v4 = vld [vmem:[%s1590_s1 + $0x218] sm:$0xff] }
  0x2c   :  { %242 = vmatpush.msra.mxu2 %v217_v5  ;;  %311 = vmatpush.msra.mxu3 %v286_v6  ;;  %v354_v5 = vld [vmem:[%s1590_s1 + $0x210] sm:$0xff] }
  0x2d   :  { %173 = vmatpush.msra.mxu1 %v146_v8  ;;  %v353_v8 = vld [vmem:[%s1590_s1 + $0x208] sm:$0xff] }
  0x2e   :  { %243 = vmatpush.msra.mxu2 %v216_v9  ;;  %312 = vmatpush.msra.mxu3 %v285_v10  ;;  %v352_v9 = vld [vmem:[%s1590_s1 + $0x200] sm:$0xff] }
  0x2f   :  { %174 = vmatpush.msra.mxu1 %v145_v12 }
  0x30   :  { %244 = vmatpush.msra.mxu2 %v215_v13  ;;  %313 = vmatpush.msra.mxu3 %v284_v14 }
  0x31   :  { %68 = vmatmul.f32.gmra.mxu0 %v14_v18  ;;  %v214_v18 = vld [vmem:[%s1590_s1 + $0x100] sm:$0xff]  ;;  %175 = vmatpush.msra.mxu1 %v144_v17 }
  0x32   :  { %245 = vmatpush.msra.mxu2 %v214_v18  ;;  %v282_v18 = vld [vmem:[#allocation2 + $0xa8] ss:$4 sm:$0xff] }
  0x33   :  { %368 = vmatpush.msrb.mxu1 %v367_v42  ;;  %v479_v42 = vld [vmem:[%s1590_s1 + $0x348] sm:$0xff] }
  0x35   :  { %369 = vmatpush.msrb.mxu1 %v366_v43  ;;  %v432_v43 = vld [vmem:[%s1590_s1 + $0x2c0] sm:$0xff] }
  0x37   :  { %370 = vmatpush.msrb.mxu1 %v365_v49 }
  0x39   :  { %71 = vmatmul.f32.gmra.mxu0 %v15_v19  ;;  %v283_v19 = vld [vmem:[%s1590_s1 + $0x180] sm:$0xff]  ;;  %371 = vmatpush.msrb.mxu1 %v364_v50  ;;  %v429_v50 = vld [vmem:[%s1590_s1 + $0x2a8] sm:$0xff] }
  0x3a   :  { %314 = vmatpush.msra.mxu3 %v283_v19 }
  0x41   :  { %74 = vmatmul.f32.gmra.mxu0 %v16_v20 }
  0x49   :  { %77 = vmatmul.f32.gmra.mxu0 %v17_v21 }
  0x51   :  { %80 = vmatmul.f32.gmra.mxu0 %v18_v22 }
  0x59   :  { %83 = vmatmul.f32.gmra.mxu0 %v19_v23 }
  0x61   :  { %86 = vmatmul.f32.gmra.mxu0 %v20_v24 }
  0x69   :  { %89 = vmatmul.f32.gmra.mxu0 %v21_v25 }
  0x71   :  { %92 = vmatmul.f32.gmra.mxu0 %v22_v26 }
  0x79   :  { %95 = vmatmul.f32.gmra.mxu0 %v23_v27 }
  0x81   :  { %98 = vmatmul.f32.gmra.mxu0 %v24_v28 }
  0x89   :  { %101 = vmatmul.f32.gmra.mxu0 %v25_v38 }
  0x91   :  { %104 = vmatmul.f32.gmra.mxu0 %v26_v51  ;;  %v363_v51 = vld [vmem:[%s1590_s1 + $0x258] sm:$0xff] }
  0x92   :  { %372 = vmatpush.msrb.mxu1 %v363_v51  ;;  %v475_v51 = vld [vmem:[%s1590_s1 + $0x328] sm:$0xff] }
  0x94   :  { %373 = vmatpush.msrb.mxu1 %v362_v54  ;;  %v427_v54 = vld [vmem:[%s1590_s1 + $0x298] sm:$0xff] }
  0x96   :  { %374 = vmatpush.msrb.mxu1 %v361_v55  ;;  %v473_v55 = vld [vmem:[%s1590_s1 + $0x318] sm:$0xff] }
  0x98   :  { %375 = vmatpush.msrb.mxu1 %v360_v58 }
  0x99   :  { %107 = vmatmul.f32.gmra.mxu0 %v27_v0 }
  0x9a   :  { %376 = vmatpush.msrb.mxu1 %v359_v59  ;;  %v425_v59 = vld [vmem:[%s1590_s1 + $0x288] sm:$0xff] }
  0x9c   :  { %377 = vmatpush.msrb.mxu1 %v358_v60  ;;  %v471_v60 = vld [vmem:[%s1590_s1 + $0x308] sm:$0xff] }
  0x9e   :  { %v63_v15 = vpop.f32.mrf.mxu0  ;;  %378 = vmatpush.msrb.mxu1 %v357_v61  ;;  %v424_v61 = vld [vmem:[%s1590_s1 + $0x280] sm:$0xff] }
  0x9f   :  { %v64_v16 = vadd.f32 %v1080_v11, %v63_v15 }
  0xa0   :  { %379 = vmatpush.msrb.mxu1 %v356_v3  ;;  %v574_v3 = vld [vmem:[%s1590_s1 + $0x470] sm:$0xff] }
  0xa1   :  { %115 = vst [vmem:[#allocation2 + $0x8] sm:$0xff] %v64_v16 }
  0xa2   :  { %380 = vmatpush.msrb.mxu1 %v355_v4  ;;  %v1285_v4 = vld [vmem:[%s1590_s1 + $0x681] ss:$0 sm:$0xff] }
  0xa4   :  { %381 = vmatpush.msrb.mxu1 %v354_v5 }
  0xa6   :  { %v66_v20 = vpop.f32.mrf.mxu0  ;;  %382 = vmatpush.msrb.mxu1 %v353_v8  ;;  %v573_v8 = vld [vmem:[%s1590_s1 + $0x468] sm:$0xff] }
  0xa7   :  { %v67_v21 = vadd.f32 %v1080_v11, %v66_v20 }
  0xa8   :  { %383 = vmatpush.msrb.mxu1 %v352_v9 }
  0xa9   :  { %116 = vst [vmem:[#allocation2 + $0x10] sm:$0xff] %v67_v21 }
  0xae   :  { %v69_v22 = vpop.f32.mrf.mxu0 }
  0xaf   :  { %v70_v23 = vadd.f32 %v1080_v11, %v69_v22 }
  0xb1   :  { %117 = vst [vmem:[#allocation2 + $0x18] sm:$0xff] %v70_v23  ;;  %v345_v23 = vld [vmem:[#allocation2 + $0x49] ss:$4 sm:$0xff] }
  0xb6   :  { %v72_v24 = vpop.f32.mrf.mxu0 }
  0xb7   :  { %v73_v25 = vadd.f32 %v1080_v11, %v72_v24 }
  0xb9   :  { %118 = vst [vmem:[#allocation2 + $0x20] sm:$0xff] %v73_v25  ;;  %v351_v25 = vld [vmem:[#allocation2 + $0xa9] ss:$4 sm:$0xff] }
  0xbe   :  { %v75_v26 = vpop.f32.mrf.mxu0 }
  0xbf   :  { %v76_v27 = vadd.f32 %v1080_v11, %v75_v26 }
  0xc0   :  { %v133_v28 = vld [vmem:[#allocation2 + $0x6] ss:$4 sm:$0xff]  ;;  %v203_v29 = vld [vmem:[#allocation2 + $0x7] ss:$4 sm:$0xff]  ;;  %v272_v30 = vld [vmem:[#allocation2 + $0x8] ss:$4 sm:$0xff] }
  0xc1   :  { %119 = vst [vmem:[#allocation2 + $0x28] sm:$0xff] %v76_v27  ;;  %176 = vmatmul.f32.vlgmr.msra.gmra.mxu1 %v133_v28  ;;  %246 = vmatmul.f32.vlgmr.msra.gmra.mxu2 %v203_v29  ;;  %v341_v21 = vld [vmem:[#allocation2 + $0x9] ss:$4 sm:$0xff] }
  0xc2   :  { %315 = vmatmul.f32.vlgmr.msra.gmra.mxu3 %v272_v30  ;;  %v439_v27 = vld [vmem:[%s1590_s1 + $0x2f8] sm:$0xff]  ;;  %v438_v30 = vld [vmem:[%s1590_s1 + $0x2f0] sm:$0xff] }
  0xc3   :  { %v485_v28 = vld [vmem:[%s1590_s1 + $0x378] sm:$0xff]  ;;  %440 = vmatpush.msrb.mxu2 %v439_v27 }
  0xc4   :  { %486 = vmatpush.msrb.mxu3 %v485_v28  ;;  %v522_v27 = vld [vmem:[%s1590_s1 + $0x3b8] sm:$0xff] }
  0xc5   :  { %441 = vmatpush.msrb.mxu2 %v438_v30  ;;  %v521_v30 = vld [vmem:[%s1590_s1 + $0x3b0] sm:$0xff] }
  0xc6   :  { %v78_v31 = vpop.f32.mrf.mxu0 }
  0xc7   :  { %v79_v32 = vadd.f32 %v1080_v11, %v78_v31  ;;  %v484_v31 = vld [vmem:[%s1590_s1 + $0x370] sm:$0xff] }
  0xc8   :  { %487 = vmatpush.msrb.mxu3 %v484_v31  ;;  %v566_v31 = vld [vmem:[%s1590_s1 + $0x430] sm:$0xff] }
  0xc9   :  { %120 = vst [vmem:[#allocation2 + $0x30] sm:$0xff] %v79_v32  ;;  %v437_v32 = vld [vmem:[%s1590_s1 + $0x2e8] sm:$0xff] }
  0xca   :  { %442 = vmatpush.msrb.mxu2 %v437_v32 }
  0xce   :  { %v81_v33 = vpop.f32.mrf.mxu0 }
  0xcf   :  { %v82_v34 = vadd.f32 %v1080_v11, %v81_v33  ;;  %v483_v33 = vld [vmem:[%s1590_s1 + $0x368] sm:$0xff] }
  0xd0   :  { %488 = vmatpush.msrb.mxu3 %v483_v33 }
  0xd1   :  { %121 = vst [vmem:[#allocation2 + $0x38] sm:$0xff] %v82_v34  ;;  %v436_v34 = vld [vmem:[%s1590_s1 + $0x2e0] sm:$0xff] }
  0xd2   :  { %443 = vmatpush.msrb.mxu2 %v436_v34 }
  0xd6   :  { %v84_v35 = vpop.f32.mrf.mxu0 }
  0xd7   :  { %v85_v36 = vadd.f32 %v1080_v11, %v84_v35  ;;  %v482_v35 = vld [vmem:[%s1590_s1 + $0x360] sm:$0xff] }
  0xd8   :  { %489 = vmatpush.msrb.mxu3 %v482_v35 }
  0xd9   :  { %122 = vst [vmem:[#allocation2 + $0x40] sm:$0xff] %v85_v36  ;;  %v435_v36 = vld [vmem:[%s1590_s1 + $0x2d8] sm:$0xff] }
  0xda   :  { %444 = vmatpush.msrb.mxu2 %v435_v36 }
  0xde   :  { %v87_v37 = vpop.f32.mrf.mxu0 }
  0xdf   :  { %v88_v38 = vadd.f32 %v1080_v11, %v87_v37  ;;  %v481_v37 = vld [vmem:[%s1590_s1 + $0x358] sm:$0xff] }
  0xe0   :  { %v135_v39 = vld [vmem:[#allocation2 + $0x26] ss:$4 sm:$0xff]  ;;  %v205_v40 = vld [vmem:[#allocation2 + $0x27] ss:$4 sm:$0xff]  ;;  %v274_v41 = vld [vmem:[#allocation2 + $0x28] ss:$4 sm:$0xff]  ;;  %490 = vmatpush.msrb.mxu3 %v481_v37 }
  0xe1   :  { %123 = vst [vmem:[#allocation2 + $0x68] sm:$0xff] %v88_v38  ;;  %179 = vmatmul.f32.gmra.mxu1 %v135_v39  ;;  %249 = vmatmul.f32.gmra.mxu2 %v205_v40  ;;  %v137_v47 = vld [vmem:[#allocation2 + $0x46] ss:$4 sm:$0xff]  ;;  %v207_v48 = vld [vmem:[#allocation2 + $0x47] ss:$4 sm:$0xff] }
  0xe2   :  { %318 = vmatmul.f32.gmra.mxu3 %v274_v41  ;;  %v343_v22 = vld [vmem:[#allocation2 + $0x29] ss:$4 sm:$0xff] }
  0xe3   :  { %v434_v38 = vld [vmem:[%s1590_s1 + $0x2d0] sm:$0xff]  ;;  %v433_v41 = vld [vmem:[%s1590_s1 + $0x2c8] sm:$0xff] }
  0xe4   :  { %v480_v39 = vld [vmem:[%s1590_s1 + $0x350] sm:$0xff]  ;;  %445 = vmatpush.msrb.mxu2 %v434_v38  ;;  %v520_v37 = vld [vmem:[%s1590_s1 + $0x3a8] sm:$0xff] }
  0xe5   :  { %491 = vmatpush.msrb.mxu3 %v480_v39  ;;  %v565_v38 = vld [vmem:[%s1590_s1 + $0x428] sm:$0xff] }
  0xe6   :  { %v90_v44 = vpop.f32.mrf.mxu0  ;;  %446 = vmatpush.msrb.mxu2 %v433_v41  ;;  %v519_v41 = vld [vmem:[%s1590_s1 + $0x3a0] sm:$0xff] }
  0xe7   :  { %v91_v45 = vadd.f32 %v1080_v11, %v90_v44  ;;  %492 = vmatpush.msrb.mxu3 %v479_v42  ;;  %v478_v44 = vld [vmem:[%s1590_s1 + $0x340] sm:$0xff]  ;;  %v518_v42 = vld [vmem:[%s1590_s1 + $0x398] sm:$0xff] }
  0xe8   :  { %447 = vmatpush.msrb.mxu2 %v432_v43 }
  0xe9   :  { %124 = vst [vmem:[#allocation2 + $0x70] sm:$0xff] %v91_v45  ;;  %182 = vmatmul.f32.gmra.mxu1 %v137_v47  ;;  %252 = vmatmul.f32.gmra.mxu2 %v207_v48  ;;  %v431_v45 = vld [vmem:[%s1590_s1 + $0x2b8] sm:$0xff]  ;;  %v430_v47 = vld [vmem:[%s1590_s1 + $0x2b0] sm:$0xff] }
  0xea   :  { %321 = vmatmul.f32.gmra.mxu3 %v276_v46  ;;  %v477_v46 = vld [vmem:[%s1590_s1 + $0x338] sm:$0xff]  ;;  %v476_v48 = vld [vmem:[%s1590_s1 + $0x330] sm:$0xff]  ;;  %448 = vmatpush.msrb.mxu2 %v431_v45 }
  0xeb   :  { %493 = vmatpush.msrb.mxu3 %v478_v44  ;;  %v563_v44 = vld [vmem:[%s1590_s1 + $0x418] sm:$0xff]  ;;  %v517_v45 = vld [vmem:[%s1590_s1 + $0x390] sm:$0xff] }
  0xec   :  { %449 = vmatpush.msrb.mxu2 %v430_v47 }
  0xed   :  { %494 = vmatpush.msrb.mxu3 %v477_v46  ;;  %v562_v46 = vld [vmem:[%s1590_s1 + $0x410] sm:$0xff] }
  0xee   :  { %v93_v52 = vpop.f32.mrf.mxu0  ;;  %450 = vmatpush.msrb.mxu2 %v429_v50  ;;  %v516_v50 = vld [vmem:[%s1590_s1 + $0x388] sm:$0xff] }
  0xef   :  { %v94_v53 = vadd.f32 %v1080_v11, %v93_v52  ;;  %495 = vmatpush.msrb.mxu3 %v476_v48  ;;  %v428_v52 = vld [vmem:[%s1590_s1 + $0x2a0] sm:$0xff] }
  0xf0   :  { %451 = vmatpush.msrb.mxu2 %v428_v52 }
  0xf1   :  { %125 = vst [vmem:[#allocation2 + $0x78] sm:$0xff] %v94_v53  ;;  %496 = vmatpush.msrb.mxu3 %v475_v51  ;;  %v474_v53 = vld [vmem:[%s1590_s1 + $0x320] sm:$0xff]  ;;  %v561_v51 = vld [vmem:[%s1590_s1 + $0x408] sm:$0xff] }
  0xf2   :  { %452 = vmatpush.msrb.mxu2 %v427_v54 }
  0xf3   :  { %497 = vmatpush.msrb.mxu3 %v474_v53 }
  0xf5   :  { %498 = vmatpush.msrb.mxu3 %v473_v55  ;;  %v515_v55 = vld [vmem:[%s1590_s1 + $0x380] sm:$0xff] }
  0xf6   :  { %v96_v56 = vpop.f32.mrf.mxu0 }
  0xf7   :  { %v97_v57 = vadd.f32 %v1080_v11, %v96_v56  ;;  %v426_v56 = vld [vmem:[%s1590_s1 + $0x290] sm:$0xff] }
  0xf8   :  { %453 = vmatpush.msrb.mxu2 %v426_v56  ;;  %v560_v56 = vld [vmem:[%s1590_s1 + $0x400] sm:$0xff] }
  0xf9   :  { %126 = vst [vmem:[#allocation2 + $0x80] sm:$0xff] %v97_v57  ;;  %v472_v57 = vld [vmem:[%s1590_s1 + $0x310] sm:$0xff] }
  0xfa   :  { %499 = vmatpush.msrb.mxu3 %v472_v57  ;;  %454 = vmatpush.msrb.mxu2 %v425_v59 }
  0xfc   :  { %500 = vmatpush.msrb.mxu3 %v471_v60  ;;  %455 = vmatpush.msrb.mxu2 %v424_v61 }
  0xfe   :  { %v99_v62 = vpop.f32.mrf.mxu0 }
  0xff   :  { %v100_v63 = vadd.f32 %v1080_v11, %v99_v62  ;;  %v470_v62 = vld [vmem:[%s1590_s1 + $0x300] sm:$0xff] }
 0x100   :  { %v139_v0 = vld [vmem:[#allocation2 + $0x66] ss:$4 sm:$0xff]  ;;  %v209_v1 = vld [vmem:[#allocation2 + $0x67] ss:$4 sm:$0xff]  ;;  %v278_v2 = vld [vmem:[#allocation2 + $0x68] ss:$4 sm:$0xff]  ;;  %501 = vmatpush.msrb.mxu3 %v470_v62 }
 0x101   :  { %127 = vst [vmem:[#allocation2 + $0x88] sm:$0xff] %v100_v63  ;;  %185 = vmatmul.f32.gmra.mxu1 %v139_v0  ;;  %255 = vmatmul.f32.gmra.mxu2 %v209_v1  ;;  %v530_v63 = vld [vmem:[%s1590_s1 + $0x3f8] sm:$0xff] }
 0x102   :  { %324 = vmatmul.f32.gmra.mxu3 %v278_v2  ;;  %v575_v1 = vld [vmem:[%s1590_s1 + $0x478] sm:$0xff]  ;;  %v529_v2 = vld [vmem:[%s1590_s1 + $0x3f0] sm:$0xff]  ;;  %531 = vmatpush.msra.mxu2 %v530_v63 }
 0x103   :  { %576 = vmatpush.msra.mxu3 %v575_v1 }
 0x104   :  { %532 = vmatpush.msra.mxu2 %v529_v2 }
 0x105   :  { %577 = vmatpush.msra.mxu3 %v574_v3  ;;  %v738_v3 = vld [vmem:[%s1590_s1 + $0x678] sm:$0xff] }
 0x106   :  { %v102_v6 = vpop.f32.mrf.mxu0  ;;  %739 = vmatpush.msrb.mxu0 %v738_v3  ;;  %v609_v3 = vld [vmem:[%s1590_s1 + $0x4a0] sm:$0xff] }
 0x107   :  { %v103_v7 = vadd.f32 %v1080_v11, %v102_v6  ;;  %578 = vmatpush.msra.mxu3 %v573_v8  ;;  %v736_v8 = vld [vmem:[%s1590_s1 + $0x668] sm:$0xff] }
 0x109   :  { %128 = vst [vmem:[#allocation2 + $0x90] sm:$0xff] %v103_v7  ;;  %v528_v7 = vld [vmem:[%s1590_s1 + $0x3e8] sm:$0xff] }
 0x10a   :  { %533 = vmatpush.msra.mxu2 %v528_v7 }
 0x10e   :  { %v105_v10 = vpop.f32.mrf.mxu0 }
 0x10f   :  { %v106_v12 = vadd.f32 %v1080_v11, %v105_v10  ;;  %v527_v10 = vld [vmem:[%s1590_s1 + $0x3e0] sm:$0xff] }
 0x110   :  { %534 = vmatpush.msra.mxu2 %v527_v10 }
 0x111   :  { %129 = vst [vmem:[#allocation2 + $0x98] sm:$0xff] %v106_v12  ;;  %v572_v12 = vld [vmem:[%s1590_s1 + $0x460] sm:$0xff] }
 0x112   :  { %579 = vmatpush.msra.mxu3 %v572_v12 }
 0x116   :  { %v108_v13 = vpop.f32.mrf.mxu0 }
 0x117   :  { %v109_v14 = vadd.f32 %v1080_v11, %v108_v13  ;;  %v347_v11 = vld [vmem:[#allocation2 + $0x69] ss:$4 sm:$0xff] }
 0x118   :  { %v526_v13 = vld [vmem:[%s1590_s1 + $0x3d8] sm:$0xff] }
 0x119   :  { %130 = vst [vmem:[#allocation2 + $0xa0] sm:$0xff] %v109_v14  ;;  %535 = vmatpush.msra.mxu2 %v526_v13 }
 0x120   :  { %v141_v15 = vld [vmem:[#allocation2 + $0x86] ss:$4 sm:$0xff]  ;;  %v211_v16 = vld [vmem:[#allocation2 + $0x87] ss:$4 sm:$0xff]  ;;  %v280_v17 = vld [vmem:[#allocation2 + $0x88] ss:$4 sm:$0xff] }
 0x121   :  { %188 = vmatmul.f32.gmra.mxu1 %v141_v15  ;;  %258 = vmatmul.f32.gmra.mxu2 %v211_v16  ;;  %v143_v19 = vld [vmem:[#allocation2 + $0xa6] ss:$4 sm:$0xff]  ;;  %v213_v20 = vld [vmem:[#allocation2 + $0xa7] ss:$4 sm:$0xff]  ;;  %v349_v24 = vld [vmem:[#allocation2 + $0x89] ss:$4 sm:$0xff] }
 0x122   :  { %327 = vmatmul.f32.gmra.mxu3 %v280_v17  ;;  %v571_v16 = vld [vmem:[%s1590_s1 + $0x458] sm:$0xff]  ;;  %v525_v17 = vld [vmem:[%s1590_s1 + $0x3d0] sm:$0xff] }
 0x123   :  { %580 = vmatpush.msra.mxu3 %v571_v16  ;;  %536 = vmatpush.msra.mxu2 %v525_v17  ;;  %v733_v17 = vld [vmem:[%s1590_s1 + $0x650] sm:$0xff] }
 0x129   :  { %191 = vmatmul.f32.gmra.mxu1 %v143_v19  ;;  %261 = vmatmul.f32.gmra.mxu2 %v213_v20 }
 0x12a   :  { %330 = vmatmul.f32.gmra.mxu3 %v282_v18  ;;  %v570_v18 = vld [vmem:[%s1590_s1 + $0x450] sm:$0xff] }
 0x12b   :  { %581 = vmatpush.msra.mxu3 %v570_v18 }
 0x131   :  { %384 = vmatmul.f32.vlgmr.msrb.gmra.mxu1 %v341_v21 }
 0x139   :  { %387 = vmatmul.f32.gmra.mxu1 %v343_v22 }
 0x13e   :  { %v1164_v26 = vpop.f32.mrf.mxu1 }
 0x13f   :  { %v196_v6 = vadd.f32 %v1285_v4, %v1164_v26  ;;  %v568_v26 = vld [vmem:[%s1590_s1 + $0x440] sm:$0xff] }
 0x141   :  { %390 = vmatmul.f32.gmra.mxu1 %v345_v23  ;;  %v524_v23 = vld [vmem:[%s1590_s1 + $0x3c8] sm:$0xff] }
 0x142   :  { %537 = vmatpush.msra.mxu2 %v524_v23 }
 0x144   :  { %v247_v0 = vpop.f32.mrf.mxu2 }
 0x145   :  { %v265_v9 = vadd.f32 %v247_v0, %v196_v6  ;;  %v316_v14 = vpop.f32.mrf.mxu3  ;;  %v737_v6 = vld [vmem:[%s1590_s1 + $0x670] sm:$0xff] }
 0x146   :  { %740 = vmatpush.msrb.mxu0 %v737_v6  ;;  %v649_v6 = vld [vmem:[%s1590_s1 + $0x520] sm:$0xff] }
 0x147   :  { %v334_v19 = vadd.f32 %v316_v14, %v265_v9 }
 0x148   :  { %741 = vmatpush.msrb.mxu0 %v736_v8  ;;  %v608_v8 = vld [vmem:[%s1590_s1 + $0x498] sm:$0xff] }
 0x149   :  { %393 = vmatmul.f32.gmra.mxu1 %v347_v11  ;;  %v569_v11 = vld [vmem:[%s1590_s1 + $0x448] sm:$0xff] }
 0x14a   :  { %582 = vmatpush.msra.mxu3 %v569_v11 }
 0x14c   :  { %583 = vmatpush.msra.mxu3 %v568_v26 }
 0x151   :  { %396 = vmatmul.f32.gmra.mxu1 %v349_v24 }
 0x159   :  { %399 = vmatmul.f32.gmra.mxu1 %v351_v25  ;;  %v523_v25 = vld [vmem:[%s1590_s1 + $0x3c0] sm:$0xff] }
 0x15a   :  { %538 = vmatpush.msra.mxu2 %v523_v25 }
 0x15c   :  { %539 = vmatpush.msra.mxu2 %v522_v27 }
 0x15e   :  { %v1172_v29 = vpop.f32.mrf.mxu1  ;;  %540 = vmatpush.msra.mxu2 %v521_v30  ;;  %v619_v30 = vld [vmem:[%s1590_s1 + $0x4f0] sm:$0xff] }
 0x15f   :  { %v197_v21 = vadd.f32 %v1285_v4, %v1172_v29  ;;  %v567_v29 = vld [vmem:[%s1590_s1 + $0x438] sm:$0xff] }
 0x160   :  { %584 = vmatpush.msra.mxu3 %v567_v29  ;;  %541 = vmatpush.msra.mxu2 %v520_v37  ;;  %v620_v29 = vld [vmem:[%s1590_s1 + $0x4f8] sm:$0xff] }
 0x161   :  { %621 = vmatpush.msra.mxu1 %v620_v29  ;;  %v616_v37 = vld [vmem:[%s1590_s1 + $0x4d8] sm:$0xff] }
 0x162   :  { %585 = vmatpush.msra.mxu3 %v566_v31  ;;  %542 = vmatpush.msra.mxu2 %v519_v41  ;;  %v728_v31 = vld [vmem:[%s1590_s1 + $0x628] sm:$0xff]  ;;  %v615_v41 = vld [vmem:[%s1590_s1 + $0x4d0] sm:$0xff] }
 0x163   :  { %622 = vmatpush.msra.mxu1 %v619_v30 }
 0x164   :  { %v250_v15 = vpop.f32.mrf.mxu2  ;;  %586 = vmatpush.msra.mxu3 %v565_v38  ;;  %543 = vmatpush.msra.mxu2 %v518_v42  ;;  %v659_v38 = vld [vmem:[%s1590_s1 + $0x570] sm:$0xff]  ;;  %v697_v42 = vld [vmem:[%s1590_s1 + $0x5e8] sm:$0xff] }
 0x165   :  { %v266_v24 = vadd.f32 %v250_v15, %v197_v21  ;;  %v319_v28 = vpop.f32.mrf.mxu3  ;;  %v734_v15 = vld [vmem:[%s1590_s1 + $0x658] sm:$0xff] }
 0x166   :  { %v1204_v40 = vpop.f32.mrf.mxu1  ;;  %544 = vmatpush.msra.mxu2 %v517_v45  ;;  %v696_v45 = vld [vmem:[%s1590_s1 + $0x5e0] sm:$0xff] }
 0x167   :  { %v335_v33 = vadd.f32 %v319_v28, %v266_v24  ;;  %v198_v35 = vadd.f32 %v1285_v4, %v1204_v40  ;;  %v564_v40 = vld [vmem:[%s1590_s1 + $0x420] sm:$0xff]  ;;  %v729_v28 = vld [vmem:[%s1590_s1 + $0x630] sm:$0xff] }
 0x168   :  { %587 = vmatpush.msra.mxu3 %v564_v40  ;;  %545 = vmatpush.msra.mxu2 %v516_v50  ;;  %v658_v40 = vld [vmem:[%s1590_s1 + $0x568] sm:$0xff]  ;;  %v726_v50 = vld [vmem:[%s1590_s1 + $0x618] sm:$0xff] }
 0x16a   :  { %588 = vmatpush.msra.mxu3 %v563_v44  ;;  %546 = vmatpush.msra.mxu2 %v515_v55  ;;  %v657_v44 = vld [vmem:[%s1590_s1 + $0x560] sm:$0xff]  ;;  %v612_v55 = vld [vmem:[%s1590_s1 + $0x4b8] sm:$0xff] }
 0x16c   :  { %v253_v32 = vpop.f32.mrf.mxu2  ;;  %589 = vmatpush.msra.mxu3 %v562_v46  ;;  %v613_v46 = vld [vmem:[%s1590_s1 + $0x4c0] sm:$0xff] }
 0x16d   :  { %v267_v39 = vadd.f32 %v253_v32, %v198_v35  ;;  %v322_v43 = vpop.f32.mrf.mxu3  ;;  %v618_v32 = vld [vmem:[%s1590_s1 + $0x4e8] sm:$0xff]  ;;  %v727_v35 = vld [vmem:[%s1590_s1 + $0x620] sm:$0xff] }
 0x16e   :  { %590 = vmatpush.msra.mxu3 %v561_v51  ;;  %623 = vmatpush.msra.mxu1 %v618_v32  ;;  %v655_v51 = vld [vmem:[%s1590_s1 + $0x550] sm:$0xff] }
 0x16f   :  { %v336_v48 = vadd.f32 %v322_v43, %v267_v39  ;;  %v698_v39 = vld [vmem:[%s1590_s1 + $0x5f0] sm:$0xff]  ;;  %v614_v43 = vld [vmem:[%s1590_s1 + $0x4c8] sm:$0xff] }
 0x170   :  { %591 = vmatpush.msra.mxu3 %v560_v56  ;;  %v611_v56 = vld [vmem:[%s1590_s1 + $0x4b0] sm:$0xff] }
 0x17e   :  { %v1230_v49 = vpop.f32.mrf.mxu1 }
 0x17f   :  { %v199_v53 = vadd.f32 %v1285_v4, %v1230_v49 }
 0x184   :  { %v256_v47 = vpop.f32.mrf.mxu2 }
 0x185   :  { %v268_v60 = vadd.f32 %v256_v47, %v199_v53  ;;  %v325_v61 = vpop.f32.mrf.mxu3  ;;  %v656_v47 = vld [vmem:[%s1590_s1 + $0x558] sm:$0xff]  ;;  %v654_v53 = vld [vmem:[%s1590_s1 + $0x548] sm:$0xff] }
 0x187   :  { %v337_v62 = vadd.f32 %v325_v61, %v268_v60  ;;  %v652_v60 = vld [vmem:[%s1590_s1 + $0x538] sm:$0xff] }
 0x188   :  { %v691_v61 = vld [vmem:[%s1590_s1 + $0x5b8] sm:$0xff] }
 0x19e   :  { %v1256_v58 = vpop.f32.mrf.mxu1 }
 0x19f   :  { %v200_v0 = vadd.f32 %v1285_v4, %v1256_v58  ;;  %v735_v58 = vld [vmem:[%s1590_s1 + $0x660] sm:$0xff] }
 0x1a0   :  { %742 = vmatpush.msrb.mxu0 %v735_v58  ;;  %v687_v58 = vld [vmem:[%s1590_s1 + $0x598] sm:$0xff] }
 0x1a2   :  { %743 = vmatpush.msrb.mxu0 %v734_v15 }
 0x1a4   :  { %v259_v49 = vpop.f32.mrf.mxu2  ;;  %744 = vmatpush.msrb.mxu0 %v733_v17  ;;  %v606_v17 = vld [vmem:[%s1590_s1 + $0x488] sm:$0xff] }
 0x1a5   :  { %v269_v2 = vadd.f32 %v259_v49, %v200_v0  ;;  %v328_v7 = vpop.f32.mrf.mxu3  ;;  %v610_v49 = vld [vmem:[%s1590_s1 + $0x4a8] sm:$0xff]  ;;  %v690_v0 = vld [vmem:[%s1590_s1 + $0x5b0] sm:$0xff] }
 0x1a6   :  { %v1287_v5 = vpop.f32.mrf.mxu1 }
 0x1a7   :  { %v338_v9 = vadd.f32 %v328_v7, %v269_v2  ;;  %v201_v13 = vadd.f32 %v1285_v4, %v1287_v5  ;;  %v731_v5 = vld [vmem:[%s1590_s1 + $0x640] sm:$0xff]  ;;  %v689_v2 = vld [vmem:[%s1590_s1 + $0x5a8] sm:$0xff] }
 0x1a8   :  { %v688_v7 = vld [vmem:[%s1590_s1 + $0x5a0] sm:$0xff] }
 0x1ac   :  { %v262_v10 = vpop.f32.mrf.mxu2 }
 0x1ad   :  { %v270_v16 = vadd.f32 %v262_v10, %v201_v13  ;;  %v331_v18 = vpop.f32.mrf.mxu3  ;;  %v724_v10 = vld [vmem:[%s1590_s1 + $0x608] sm:$0xff]  ;;  %v647_v13 = vld [vmem:[%s1590_s1 + $0x510] sm:$0xff] }
 0x1ae   :  { %v385_v20 = vpop.f32.mrf.mxu1 }
 0x1af   :  { %v403_v22 = vadd.f32 %v385_v20, %v334_v19  ;;  %v732_v19 = vld [vmem:[%s1590_s1 + $0x648] sm:$0xff]  ;;  %v339_v4 = vadd.f32 %v331_v18, %v270_v16  ;;  %v686_v16 = vld [vmem:[%s1590_s1 + $0x590] sm:$0xff] }
 0x1b0   :  { %745 = vmatpush.msrb.mxu0 %v732_v19  ;;  %v646_v18 = vld [vmem:[%s1590_s1 + $0x508] sm:$0xff] }
 0x1b1   :  { %413 = vst [vmem:[#allocation3 + $0x8] sm:$0xff] %v403_v22  ;;  %v730_v22 = vld [vmem:[%s1590_s1 + $0x638] sm:$0xff]  ;;  %v685_v19 = vld [vmem:[%s1590_s1 + $0x588] sm:$0xff] }
 0x1b2   :  { %746 = vmatpush.msrb.mxu0 %v731_v5  ;;  %v605_v5 = vld [vmem:[%s1590_s1 + $0x480] sm:$0xff] }
 0x1b4   :  { %747 = vmatpush.msrb.mxu0 %v730_v22  ;;  %v806_v22 = vld [vmem:[%s1590_s1 + $0x682] ss:$0 sm:$0xff] }
 0x1b6   :  { %v388_v34 = vpop.f32.mrf.mxu1  ;;  %748 = vmatpush.msrb.mxu0 %v729_v28 }
 0x1b7   :  { %v404_v36 = vadd.f32 %v388_v34, %v335_v33  ;;  %v660_v33 = vld [vmem:[%s1590_s1 + $0x578] sm:$0xff] }
 0x1b8   :  { %v699_v34 = vld [vmem:[%s1590_s1 + $0x5f8] sm:$0xff]  ;;  %749 = vmatpush.msrb.mxu0 %v728_v31 }
 0x1b9   :  { %414 = vst [vmem:[#allocation3 + $0x10] sm:$0xff] %v404_v36  ;;  %v617_v36 = vld [vmem:[%s1590_s1 + $0x4e0] sm:$0xff] }
 0x1ba   :  { %750 = vmatpush.msrb.mxu0 %v727_v35  ;;  %624 = vmatpush.msra.mxu1 %v617_v36 }
 0x1bc   :  { %625 = vmatpush.msra.mxu1 %v616_v37  ;;  %751 = vmatpush.msrb.mxu0 %v726_v50 }
 0x1be   :  { %v391_v52 = vpop.f32.mrf.mxu1  ;;  %626 = vmatpush.msra.mxu1 %v615_v41  ;;  %v807_v41 = vld [vmem:[%s1590_s1 + $0x683] ss:$0 sm:$0xff] }
 0x1bf   :  { %v405_v54 = vadd.f32 %v391_v52, %v336_v48  ;;  %v695_v48 = vld [vmem:[%s1590_s1 + $0x5d8] sm:$0xff]  ;;  %v694_v52 = vld [vmem:[%s1590_s1 + $0x5d0] sm:$0xff] }
 0x1c0   :  { %v421_v57 = vld [vmem:[#allocation3 + $0x6] ss:$4 sm:$0xff]  ;;  %v467_v59 = vld [vmem:[#allocation3 + $0x7] ss:$4 sm:$0xff]  ;;  %v557_v25 = vld [vmem:[#allocation3 + $0x9] ss:$4 sm:$0xff]  ;;  %627 = vmatpush.msra.mxu1 %v614_v43 }
 0x1c1   :  { %415 = vst [vmem:[#allocation3 + $0x18] sm:$0x1] %v405_v54  ;;  %456 = vmatmul.f32.vlgmr.msrb.gmra.mxu2 %v421_v57  ;;  %502 = vmatmul.f32.vlgmr.msrb.gmra.mxu3 %v467_v59  ;;  %v693_v54 = vld [vmem:[%s1590_s1 + $0x5c8] sm:$0xff]  ;;  %v653_v57 = vld [vmem:[%s1590_s1 + $0x540] sm:$0xff] }
 0x1c2   :  { %661 = vmatpush.msrb.mxu2 %v660_v33  ;;  %700 = vmatpush.msrb.mxu3 %v699_v34  ;;  %v692_v59 = vld [vmem:[%s1590_s1 + $0x5c0] sm:$0xff] }
 0x1c3   :  { %628 = vmatpush.msra.mxu1 %v613_v46 }
 0x1c4   :  { %662 = vmatpush.msrb.mxu2 %v659_v38  ;;  %701 = vmatpush.msrb.mxu3 %v698_v39 }
 0x1c5   :  { %629 = vmatpush.msra.mxu1 %v612_v55 }
 0x1c6   :  { %v394_v63 = vpop.f32.mrf.mxu1  ;;  %663 = vmatpush.msrb.mxu2 %v658_v40  ;;  %702 = vmatpush.msrb.mxu3 %v697_v42 }
 0x1c7   :  { %v406_v1 = vadd.f32 %v394_v63, %v337_v62  ;;  %v725_v62 = vld [vmem:[%s1590_s1 + $0x610] sm:$0xff]  ;;  %630 = vmatpush.msra.mxu1 %v611_v56 }
 0x1c8   :  { %v512_v24 = vld [vmem:[#allocation3 + $0x8] ss:$4 sm:$0xff]  ;;  %664 = vmatpush.msrb.mxu2 %v657_v44  ;;  %703 = vmatpush.msrb.mxu3 %v696_v45 }
 0x1c9   :  { %416 = vst [vmem:[#allocation3 + $0x28] sm:$0xff] %v406_v1  ;;  %752 = vmatpush.msrb.mxu0 %v725_v62  ;;  %v651_v63 = vld [vmem:[%s1590_s1 + $0x530] sm:$0xff]  ;;  %631 = vmatpush.msra.mxu1 %v610_v49  ;;  %v650_v1 = vld [vmem:[%s1590_s1 + $0x528] sm:$0xff] }
 0x1ca   :  { %665 = vmatpush.msrb.mxu2 %v656_v47  ;;  %704 = vmatpush.msrb.mxu3 %v695_v48 }
 0x1cb   :  { %632 = vmatpush.msra.mxu1 %v609_v3  ;;  %753 = vmatpush.msrb.mxu0 %v724_v10 }
 0x1cc   :  { %666 = vmatpush.msrb.mxu2 %v655_v51  ;;  %705 = vmatpush.msrb.mxu3 %v694_v52 }
 0x1cd   :  { %633 = vmatpush.msra.mxu1 %v608_v8 }
 0x1ce   :  { %v397_v12 = vpop.f32.mrf.mxu1  ;;  %667 = vmatpush.msrb.mxu2 %v654_v53  ;;  %706 = vmatpush.msrb.mxu3 %v693_v54 }
 0x1cf   :  { %v407_v14 = vadd.f32 %v397_v12, %v338_v9  ;;  %v648_v9 = vld [vmem:[%s1590_s1 + $0x518] sm:$0xff]  ;;  %v607_v12 = vld [vmem:[%s1590_s1 + $0x490] sm:$0xff] }
 0x1d0   :  { %668 = vmatpush.msrb.mxu2 %v653_v57  ;;  %707 = vmatpush.msrb.mxu3 %v692_v59 }
 0x1d1   :  { %417 = vst [vmem:[#allocation3 + $0x30] sm:$0xff] %v407_v14  ;;  %634 = vmatpush.msra.mxu1 %v607_v12 }
 0x1d2   :  { %669 = vmatpush.msrb.mxu2 %v652_v60  ;;  %708 = vmatpush.msrb.mxu3 %v691_v61 }
 0x1d3   :  { %635 = vmatpush.msra.mxu1 %v606_v17 }
 0x1d4   :  { %670 = vmatpush.msrb.mxu2 %v651_v63  ;;  %709 = vmatpush.msrb.mxu3 %v690_v0 }
 0x1d5   :  { %636 = vmatpush.msra.mxu1 %v605_v5 }
 0x1d6   :  { %v400_v20 = vpop.f32.mrf.mxu1  ;;  %671 = vmatpush.msrb.mxu2 %v650_v1  ;;  %710 = vmatpush.msrb.mxu3 %v689_v2 }
 0x1d7   :  { %v408_v21 = vadd.f32 %v400_v20, %v339_v4  ;;  %v723_v4 = vld [vmem:[%s1590_s1 + $0x600] sm:$0xff] }
 0x1d8   :  { %v423_v23 = vld [vmem:[#allocation3 + $0x26] ss:$4 sm:$0xff]  ;;  %v469_v11 = vld [vmem:[#allocation3 + $0x27] ss:$4 sm:$0xff]  ;;  %v559_v27 = vld [vmem:[#allocation3 + $0x29] ss:$4 sm:$0xff]  ;;  %672 = vmatpush.msrb.mxu2 %v649_v6  ;;  %711 = vmatpush.msrb.mxu3 %v688_v7 }
 0x1d9   :  { %418 = vst [vmem:[#allocation3 + $0x38] sm:$0x1] %v408_v21  ;;  %459 = vmatmul.f32.gmra.mxu2 %v423_v23  ;;  %505 = vmatmul.f32.gmra.mxu3 %v469_v11  ;;  %v645_v20 = vld [vmem:[%s1590_s1 + $0x500] sm:$0xff] }
 0x1da   :  { %673 = vmatpush.msrb.mxu2 %v648_v9  ;;  %712 = vmatpush.msrb.mxu3 %v687_v58  ;;  %v684_v21 = vld [vmem:[%s1590_s1 + $0x580] sm:$0xff]  ;;  %s839_s1 = smov [#allocation5]  }
 0x1db   :  { %754 = vmatpush.msrb.mxu0 %v723_v4  ;;  %s791_s5 = sshll.u32 %s839_s1, 4  ;;  %s792_s5 = int_to_ptr.vmem [resolvable:$true] %s791_s5 }
 0x1dc   :  { %674 = vmatpush.msrb.mxu2 %v647_v13  ;;  %713 = vmatpush.msrb.mxu3 %v686_v16 }
 0x1de   :  { %675 = vmatpush.msrb.mxu2 %v646_v18  ;;  %714 = vmatpush.msrb.mxu3 %v685_v19 }
 0x1e0   :  { %v514_v26 = vld [vmem:[#allocation3 + $0x28] ss:$4 sm:$0xff]  ;;  %676 = vmatpush.msrb.mxu2 %v645_v20  ;;  %715 = vmatpush.msrb.mxu3 %v684_v21 }
 0x1e1   :  { %547 = vmatmul.f32.vlgmr.msra.gmra.mxu2 %v512_v24  ;;  %592 = vmatmul.f32.vlgmr.msra.gmra.mxu3 %v557_v25 }
 0x1e9   :  { %550 = vmatmul.f32.gmra.mxu2 %v514_v26  ;;  %595 = vmatmul.f32.gmra.mxu3 %v559_v27 }
 0x244   :  { %v457_v14 = vpop.f32.mrf.mxu2  ;;  %v503_v15 = vpop.f32.mrf.mxu3 }
 0x245   :  { %v464_v24 = vadd.f32 %v806_v22, %v457_v14 }
 0x247   :  { %v509_v25 = vadd.f32 %v503_v15, %v464_v24 }
 0x25c   :  { %v460_v23 = vpop.f32.mrf.mxu2  ;;  %v506_v11 = vpop.f32.mrf.mxu3 }
 0x25d   :  { %v465_v29 = vadd.f32 %v806_v22, %v460_v23 }
 0x25f   :  { %v510_v31 = vadd.f32 %v506_v11, %v465_v29 }
 0x264   :  { %v548_v26 = vpop.f32.mrf.mxu2  ;;  %v593_v27 = vpop.f32.mrf.mxu3 }
 0x265   :  { %v554_v28 = vadd.f32 %v548_v26, %v509_v25 }
 0x267   :  { %v599_v30 = vadd.f32 %v593_v27, %v554_v28 }
 0x269   :  { %601 = vst [vmem:[#allocation4] sm:$0xf] %v599_v30 }
 0x26c   :  { %v551_v32 = vpop.f32.mrf.mxu2  ;;  %v596_v34 = vpop.f32.mrf.mxu3 }
 0x26d   :  { %v555_v33 = vadd.f32 %v551_v32, %v510_v31 }
 0x26f   :  { %v600_v35 = vadd.f32 %v596_v34, %v555_v33 }
 0x271   :  { %602 = vst [vmem:[#allocation4 + $0x4] sm:$0xf] %v600_v35 }
 0x278   :  { %v604_v36 = vld [vmem:[#allocation4] ss:$4 sm:$0x3]  ;;  %v644_v37 = vld [vmem:[#allocation4 + $0x1] ss:$4 sm:$0x3] }
 0x279   :  { %637 = vmatmul.f32.vlgmr.msra.gmra.mxu1 %v604_v36  ;;  %677 = vmatmul.f32.vlgmr.msrb.gmra.mxu2 %v644_v37  ;;  %v683_v38 = vld [vmem:[#allocation4 + $0x2] ss:$4 sm:$0x3]  ;;  %v722_v39 = vld [vmem:[#allocation4 + $0x3] ss:$4 sm:$0x3] }
 0x27a   :  { %716 = vmatmul.f32.vlgmr.msrb.gmra.mxu3 %v683_v38  ;;  %755 = vmatmul.f32.vlgmr.msrb.gmra.mxu0 %v722_v39 }
 0x2f6   :  { %v638_v40 = vpop.f32.mrf.mxu1 }
 0x2f7   :  { %v642_v42 = vadd.f32 %v807_v41, %v638_v40  ;;  %v756_v47 = vpop.f32.mrf.mxu0 }
 0x2fc   :  { %v678_v43 = vpop.f32.mrf.mxu2 }
 0x2fd   :  { %v681_v44 = vadd.f32 %v678_v43, %v642_v42  ;;  %v717_v45 = vpop.f32.mrf.mxu3 }
 0x2ff   :  { %v720_v46 = vadd.f32 %v717_v45, %v681_v44 }
 0x301   :  { %v759_v48 = vadd.f32 %v756_v47, %v720_v46 }
 0x303   :  { %v761_v50 = vsel %vm760_vm0, %v759_v48, -inf }
 0x304   :  { %762 = vmax.xlane.f32.xlu0 %v761_v50 }
 0x377   :  { %v763_v51 = vpop.xlane.xlu0 %762 }
 0x378   :  { %v764_v52 = vsub.f32 %v759_v48, %v763_v51 }
 0x37a   :  { %v765_v53 = vmul.f32 1.442695, %v764_v52 }
 0x37c   :  { %808 = vpow2.f32 %v765_v53 }
 0x382   :  { %v809_v54 = vpop.eup %808 }
 0x383   :  { %v767_v55 = vsel %vm760_vm0, %v809_v54, 0.0 }
 0x384   :  { %768 = vadd.xlane.f32.xlu0 %v767_v55 }
 0x3f7   :  { %v769_v56 = vpop.xlane.xlu0 %768 }
 0x3f8   :  { %810 = vrcp.f32 %v769_v56  ;;  %v781_v61 = vand.u32 2147483648, %v769_v56  ;;  %v779_v62 = vand.u32 2147483647, %v769_v56  ;;  %vm775_vm2 = vweird.f32 %v769_v56 }
 0x3fa   :  { %v782_v0 = vor.u32 1.1754944e-38, %v781_v61  ;;  %vm780_vm4 = vcmp.eq.f32.partialorder %v779_v62, 8.507059e+37 }
 0x3fe   :  { %v811_v57 = vpop.eup %810 }
 0x3ff   :  { %v771_v59 = vmul.f32 %v811_v57, %v769_v56  ;;  %vm776_vm1 = vweird.f32 %v811_v57 }
 0x400   :  { %vm777_vm3 = vmor %vm775_vm2, %vm776_vm1 }
 0x401   :  { %v772_v60 = vsub.f32 1.0, %v771_v59 }
 0x403   :  { %v773_v49 = vmul.f32 %v811_v57, %v772_v60 }
 0x405   :  { %v774_v63 = vadd.f32 %v811_v57, %v773_v49 }
 0x407   :  { %v778_v1 = vsel %vm777_vm3, %v811_v57, %v774_v63 }
 0x408   :  { %v783_v2 = vsel %vm780_vm4, %v782_v0, %v778_v1 }
 0x409   :  { %v784_v3 = vmul.f32 %v809_v54, %v783_v2 }
 0x40b   :  { %785 = vst.msk [vmem:[#allocation5] sm:$0x3] %vm760_vm0, %v784_v3 }
 0x40c   :  { %796 = dma.vmem_to_hbm [thread:$0]  %s792_s5, 32, %s794_s8, [#allocation6]  }
 0x40d   :  { %836 = dma.done.wait [#allocation6], 32  }
 0x40e   :  { %837 = vsyncadd [#allocation6], 4294967264 }
 0x40f   :  { %801 = vsyncpa [#allocation6], 1 }

</bundles_post_ra>
